<compile_context>
chip_gen: v5e
topology: v5e:2x2
jax: 0.10.0
libtpu: 0.0.40
codegen_flags: <defaults>
</compile_context>

<pallas_src>
import functools
import math

import jax
import jax.numpy as jnp
from jax.experimental import pallas as pl
from jax.experimental.pallas import tpu as pltpu


# ------------------------------- helpers ------------------------------------

def _layernorm(z, gamma, beta, eps=1e-5):
    # Single-pass statistics (var = E[z^2] - mean^2): one fewer full VALU sweep per tile,
    # which matters on v5e where elementwise work cannot be demoted to bf16.
    mu = jnp.mean(z, axis=-1, keepdims=True)
    ms = jnp.mean(z * z, axis=-1, keepdims=True)
    var = ms - mu * mu
    return (z - mu) * jax.lax.rsqrt(var + eps) * gamma + beta


def _pick_tile(n, target):
    """Largest tile <= target that evenly divides n (multiple of 8 preferred)."""
    if n <= target:
        return n
    best = 0
    for t in range(8, target + 1, 8):
        if n % t == 0:
            best = t
    return best if best else n


@functools.lru_cache(maxsize=1)
def _vmem_limit_bytes():
    """Raise the scoped-VMEM ceiling (defaults: 16 MiB v5e, 32 MiB v6e/v7x).

    Sized from the physical capacity with headroom: ~100 MiB on 128-MiB parts (v5e/v6e),
    ~56 MiB on v7x (64 MiB).  Falls back to a conservative 48 MiB if the query fails.
    """
    try:
        info = pltpu.get_tpu_info()
        for name in ("vmem_capacity_bytes", "vmem_size_bytes", "vmem_bytes"):
            cap = getattr(info, name, None)
            if cap:
                return int(min(int(cap) - 8 * 1024 * 1024, 100 * 1024 * 1024))
    except Exception:
        pass
    return 48 * 1024 * 1024


# ----------------------------- Pallas kernels --------------------------------

def _attn_ln_kernel(xq_ref, xf_ref, wq_ref, wk_ref, wv_ref, wo_ref,
                    bq_ref, bk_ref, bv_ref, bo_ref, g_ref, bln_ref,
                    o_ref, k_sc, v_sc, *, num_heads, post_norm, compute_dtype):
    qi = pl.program_id(1)
    cdt = compute_dtype
    H = num_heads
    S = k_sc.shape[1]

    # Project K/V for the whole sequence once per batch element, storing them directly
    # in head-major (H, S, Dh) scratch so no per-query-tile transpose of K/V is needed.
    # (Safe only while the qi axis stays 'arbitrary'.)
    @pl.when(qi == 0)
    def _():
        Dh_ = k_sc.shape[2]
        xf = xf_ref[...].astype(cdt)
        k = jnp.dot(xf, wk_ref[...], preferred_element_type=jnp.float32) + bk_ref[...]
        v = jnp.dot(xf, wv_ref[...], preferred_element_type=jnp.float32) + bv_ref[...]
        k_sc[...] = jnp.transpose(k.reshape(S, H, Dh_), (1, 0, 2)).astype(k_sc.dtype)
        v_sc[...] = jnp.transpose(v.reshape(S, H, Dh_), (1, 0, 2)).astype(v_sc.dtype)

    xq = xq_ref[...].astype(jnp.float32)          # (tq, E) query / residual tile, kept f32
    tq, E = xq.shape
    Dh = E // H
    scale = 1.0 / math.sqrt(Dh)

    # Full-width (MXU-friendly) Q projection: bf16 operands, f32 accumulate; softmax scale
    # folded in once.
    q = jnp.dot(xq.astype(cdt), wq_ref[...], preferred_element_type=jnp.float32) + bq_ref[...]
    q = q * scale
    qh = jnp.transpose(q.reshape(tq, H, Dh), (1, 0, 2)).astype(cdt)      # (H, tq, Dh)

    kh = k_sc[...]                                                        # (H, S, Dh) in cdt
    vh = v_sc[...]                                                        # (H, S, Dh) in cdt

    s = jnp.einsum("hqd,hkd->hqk", qh, kh, preferred_element_type=jnp.float32)
    s = s - jnp.max(s, axis=-1, keepdims=True)
    p = jnp.exp(s)                                                        # f32 exp (EUP)
    l = jnp.sum(p, axis=-1, keepdims=True)                                # (H, tq, 1) f32
    ctx = jnp.einsum("hqk,hkd->hqd", p.astype(cdt), vh,
                     preferred_element_type=jnp.float32)
    # Normalize after the PV matmul (far fewer elements than normalizing p).
    if cdt == jnp.float32:
        ctx = ctx / l                                   # exact path (validation)
    else:
        ctx = ctx * pl.reciprocal(l, approx=True)       # EUP slot; ~1e-3-level deviation
    ctx = jnp.transpose(ctx, (1, 0, 2)).reshape(tq, E)

    attn = jnp.dot(ctx.astype(cdt), wo_ref[...],
                   preferred_element_type=jnp.float32) + bo_ref[...]

    # Fused residual + LayerNorm epilogue (saves full-tensor HBM round trips), all f32.
    if post_norm:   # norm_first=False: LN(x + attn)
        out = _layernorm(xq + attn, g_ref[...], bln_ref[...])
    else:           # norm_first=True : x + LN(attn)
        out = xq + _layernorm(attn, g_ref[...], bln_ref[...])
    o_ref[...] = out.astype(o_ref.dtype)


def _ffn_ln_kernel(x_ref, w1_ref, b1_ref, w2_ref, b2_ref, g_ref, bln_ref, o_ref,
                   *, post_norm, compute_dtype):
    cdt = compute_dtype
    x = x_ref[...].astype(jnp.float32)            # (tm, E) row tile, residual kept f32
    h = jnp.dot(x.astype(cdt), w1_ref[...], preferred_element_type=jnp.float32) + b1_ref[...]
    h = jnp.maximum(h, 0.0)
    y = jnp.dot(h.astype(cdt), w2_ref[...], preferred_element_type=jnp.float32) + b2_ref[...]
    if post_norm:   # norm_first=False: LN(x + ffn)
        out = _layernorm(x + y, g_ref[...], bln_ref[...])
    else:           # norm_first=True : x + LN(ffn)
        out = x + _layernorm(y, g_ref[...], bln_ref[...])
    o_ref[...] = out.astype(o_ref.dtype)


# ------------------------------- wrappers ------------------------------------

def mha_ln_pallas(x, p, num_heads, post_norm, tq=None, compute_dtype=jnp.bfloat16):
    B, S, E = x.shape
    Dh = E // num_heads
    tq = _pick_tile(S, 256) if tq is None else tq
    n_q = S // tq
    cdt = compute_dtype
    wbytes = 2 if cdt == jnp.bfloat16 else 4

    buf1 = pl.Buffered(1)   # constant-index residents: no point double-buffering them
    w_spec = pl.BlockSpec((E, E), lambda b, qi: (0, 0), pipeline_mode=buf1)
    v_spec = pl.BlockSpec((1, E), lambda b, qi: (0, 0), pipeline_mode=buf1)
    # Full-sequence block used only at qi == 0; single-buffered (constant over qi).
    xf_spec = pl.BlockSpec((pl.Squeezed(), S, E), lambda b, qi: (b, 0, 0), pipeline_mode=buf1)

    flops = int(B * (8 * S * E * E + 4 * S * S * E))
    transc = int(B * num_heads * S * S + B * S)
    bytes_acc = int(4 * (3 * B * S * E + 6 * E) + wbytes * 4 * E * E)

    return pl.pallas_call(
        functools.partial(_attn_ln_kernel, num_heads=num_heads, post_norm=post_norm,
                          compute_dtype=cdt),
        out_shape=jax.ShapeDtypeStruct((B, S, E), x.dtype),
        grid_spec=pltpu.PrefetchScalarGridSpec(
            num_scalar_prefetch=0,
            grid=(B, n_q),
            in_specs=[
                pl.BlockSpec((pl.Squeezed(), tq, E), lambda b, qi: (b, qi, 0)),  # query/residual
                xf_spec,                                                         # full seq for K/V
                w_spec, w_spec, w_spec, w_spec,                                  # wq wk wv wo
                v_spec, v_spec, v_spec, v_spec,                                  # bq bk bv bo
                v_spec, v_spec,                                                  # ln1 gamma/beta
            ],
            out_specs=pl.BlockSpec((pl.Squeezed(), tq, E), lambda b, qi: (b, qi, 0)),
            scratch_shapes=[pltpu.VMEM((num_heads, S, Dh), cdt),   # K, head-major
                            pltpu.VMEM((num_heads, S, Dh), cdt)],  # V, head-major
        ),
        compiler_params=pltpu.CompilerParams(
            dimension_semantics=("parallel", "arbitrary"),
            vmem_limit_bytes=_vmem_limit_bytes()),
        cost_estimate=pl.CostEstimate(flops=flops, transcendentals=transc,
                                      bytes_accessed=bytes_acc),
    )(x, x,
      p["wq"].astype(cdt), p["wk"].astype(cdt), p["wv"].astype(cdt), p["wo"].astype(cdt),
      p["bq"], p["bk"], p["bv"], p["bo"], p["ln1_g"], p["ln1_b"])


def ffn_ln_pallas(x, p, post_norm, tm=None, compute_dtype=jnp.bfloat16):
    B, S, E = x.shape
    M = B * S
    Hf = p["w1"].shape[1]
    tm = _pick_tile(M, 512) if tm is None else tm
    x2d = x.reshape(M, E)
    cdt = compute_dtype
    wbytes = 2 if cdt == jnp.bfloat16 else 4

    buf1 = pl.Buffered(1)   # resident weights / biases / LN rows: single-buffered

    flops = int(4 * M * E * Hf)
    bytes_acc = int(4 * (2 * M * E + Hf + 3 * E) + wbytes * 2 * E * Hf)

    out2d = pl.pallas_call(
        functools.partial(_ffn_ln_kernel, post_norm=post_norm, compute_dtype=cdt),
        out_shape=jax.ShapeDtypeStruct((M, E), x.dtype),
        grid_spec=pltpu.PrefetchScalarGridSpec(
            num_scalar_prefetch=0,
            grid=(M // tm,),
            in_specs=[
                pl.BlockSpec((tm, E), lambda i: (i, 0)),                          # row tile
                pl.BlockSpec((E, Hf), lambda i: (0, 0), pipeline_mode=buf1),      # w1
                pl.BlockSpec((1, Hf), lambda i: (0, 0), pipeline_mode=buf1),      # b1
                pl.BlockSpec((Hf, E), lambda i: (0, 0), pipeline_mode=buf1),      # w2
                pl.BlockSpec((1, E), lambda i: (0, 0), pipeline_mode=buf1),       # b2
                pl.BlockSpec((1, E), lambda i: (0, 0), pipeline_mode=buf1),       # ln2 gamma
                pl.BlockSpec((1, E), lambda i: (0, 0), pipeline_mode=buf1),       # ln2 beta
            ],
            out_specs=pl.BlockSpec((tm, E), lambda i: (i, 0)),
        ),
        compiler_params=pltpu.CompilerParams(
            dimension_semantics=("parallel",),
            vmem_limit_bytes=_vmem_limit_bytes()),
        cost_estimate=pl.CostEstimate(flops=flops, transcendentals=M,
                                      bytes_accessed=bytes_acc),
    )(x2d, p["w1"].astype(cdt), p["b1"], p["w2"].astype(cdt), p["b2"],
      p["ln2_g"], p["ln2_b"])
    return out2d.reshape(B, S, E)


def attention_layer_forward(x, params, num_heads, norm_first=False,
                            compute_dtype=jnp.bfloat16):
    """
    norm_first=False (module default): x = LN1(x + MHA(x)); x = LN2(x + FFN(x))
    norm_first=True                  : x = x + LN1(MHA(x)); x = x + LN2(FFN(x))
    (self-attention, no mask, dropout = identity)

    compute_dtype: dtype of the MXU matmul operands (bf16 for ~2x MXU throughput and half
    the resident-weight / K/V-scratch VMEM); accumulation, softmax stats, residual and
    LayerNorm always run in f32.
    """
    post_norm = not norm_first
    x1 = mha_ln_pallas(x, params, num_heads, post_norm, compute_dtype=compute_dtype)
    return ffn_ln_pallas(x1, params, post_norm, compute_dtype=compute_dtype)


# --------------------------- pure-JAX reference ------------------------------

def _ref_forward(x, p, num_heads, norm_first):
    B, S, E = x.shape
    Dh = E // num_heads

    def ln(z, g, b):
        mu = jnp.mean(z, axis=-1, keepdims=True)
        var = jnp.mean((z - mu) ** 2, axis=-1, keepdims=True)
        return (z - mu) / jnp.sqrt(var + 1e-5) * g[0] + b[0]

    q = x @ p["wq"] + p["bq"][0]
    k = x @ p["wk"] + p["bk"][0]
    v = x @ p["wv"] + p["bv"][0]
    q = q.reshape(B, S, num_heads, Dh).transpose(0, 2, 1, 3) / math.sqrt(Dh)
    k = k.reshape(B, S, num_heads, Dh).transpose(0, 2, 1, 3)
    v = v.reshape(B, S, num_heads, Dh).transpose(0, 2, 1, 3)
    s = jnp.einsum("bhqd,bhkd->bhqk", q, k)
    a = jax.nn.softmax(s, axis=-1)
    ctx = jnp.einsum("bhqk,bhkd->bhqd", a, v).transpose(0, 2, 1, 3).reshape(B, S, E)
    attn_out = ctx @ p["wo"] + p["bo"][0]

    if norm_first:
        x1 = x + ln(attn_out, p["ln1_g"], p["ln1_b"])
    else:
        x1 = ln(x + attn_out, p["ln1_g"], p["ln1_b"])
    h = jnp.maximum(x1 @ p["w1"] + p["b1"][0], 0.0)
    ff = h @ p["w2"] + p["b2"][0]
    if norm_first:
        return x1 + ln(ff, p["ln2_g"], p["ln2_b"])
    return ln(x1 + ff, p["ln2_g"], p["ln2_b"])


# ---------------------------------- main --------------------------------------

if __name__ == "__main__":
    B, S, E, H = 2, 8, 32, 4   # batch, seq, hidden_dim, num_heads
    key = jax.random.PRNGKey(0)
    ks = jax.random.split(key, 16)

    def nrm(k, shape, scale=0.05):
        return jax.random.normal(k, shape, dtype=jnp.float32) * scale

    params = {
        # attention projections stored in "x @ W" convention (already transposed vs torch)
        "wq": nrm(ks[0], (E, E)), "wk": nrm(ks[1], (E, E)), "wv": nrm(ks[2], (E, E)),
        "wo": nrm(ks[3], (E, E)),
        "bq": nrm(ks[4], (1, E)), "bk": nrm(ks[5], (1, E)), "bv": nrm(ks[6], (1, E)),
        "bo": nrm(ks[7], (1, E)),
        # feed-forward
        "w1": nrm(ks[8], (E, 4 * E)), "b1": nrm(ks[9], (1, 4 * E)),
        "w2": nrm(ks[10], (4 * E, E)), "b2": nrm(ks[11], (1, E)),
        # layer norms
        "ln1_g": jnp.ones((1, E), jnp.float32), "ln1_b": jnp.zeros((1, E), jnp.float32),
        "ln2_g": jnp.ones((1, E), jnp.float32), "ln2_b": jnp.zeros((1, E), jnp.float32),
    }

    x = jax.random.normal(ks[12], (B, S, E), dtype=jnp.float32)

    # 1) f32 compute path: validates kernel structure/semantics tightly against the reference.
    out_f32 = attention_layer_forward(x, params, num_heads=H, norm_first=False,
                                      compute_dtype=jnp.float32)
    out_f32 = jax.block_until_ready(out_f32)
    ref = _ref_forward(x, params, H, norm_first=False)
    assert out_f32.shape == (B, S, E)
    assert jnp.allclose(out_f32, ref, atol=1e-3, rtol=1e-3), "f32 norm_first=False mismatch"

    # norm_first=True semantics (x + LN(sublayer(x)), matching the torch module) in f32.
    out_pre = attention_layer_forward(x, params, num_heads=H, norm_first=True,
                                      compute_dtype=jnp.float32)
    out_pre = jax.block_until_ready(out_pre)
    ref_pre = _ref_forward(x, params, H, norm_first=True)
    assert jnp.allclose(out_pre, ref_pre, atol=5e-3, rtol=5e-3), "f32 norm_first=True mismatch"

    # 2) bf16 performance path (default): bf16 MXU operands + approx reciprocal; looser
    #    tolerance since operand rounding introduces ~1e-2-level deviations vs the f32 reference.
    out_bf16 = attention_layer_forward(x, params, num_heads=H, norm_first=False)
    out_bf16 = jax.block_until_ready(out_bf16)
    assert jnp.allclose(out_bf16, ref, atol=2.5e-2, rtol=2.5e-2), "bf16 norm_first=False mismatch"

    print("KERNEL_OK")
</pallas_src>

<mosaic_0001>
module attributes {stable_mosaic.version = 11 : i64} {
  func.func @_attn_ln_kernel(%arg0: i32, %arg1: i32, %arg2: memref<1x8x32xf32, #tpu.memory_space<vmem>>, %arg3: memref<1x8x32xf32, #tpu.memory_space<vmem>>, %arg4: memref<32x32xf32, #tpu.memory_space<vmem>>, %arg5: memref<32x32xf32, #tpu.memory_space<vmem>>, %arg6: memref<32x32xf32, #tpu.memory_space<vmem>>, %arg7: memref<32x32xf32, #tpu.memory_space<vmem>>, %arg8: memref<1x32xf32, #tpu.memory_space<vmem>>, %arg9: memref<1x32xf32, #tpu.memory_space<vmem>>, %arg10: memref<1x32xf32, #tpu.memory_space<vmem>>, %arg11: memref<1x32xf32, #tpu.memory_space<vmem>>, %arg12: memref<1x32xf32, #tpu.memory_space<vmem>>, %arg13: memref<1x32xf32, #tpu.memory_space<vmem>>, %arg14: memref<1x8x32xf32, #tpu.memory_space<vmem>>, %arg15: memref<4x8x8xf32, #tpu.memory_space<vmem>>, %arg16: memref<4x8x8xf32, #tpu.memory_space<vmem>>) attributes {dimension_semantics = [#tpu.dimension_semantics<parallel>, #tpu.dimension_semantics<arbitrary>], iteration_bounds = array<i64: 2, 1>, scalar_prefetch = 0 : i64, scratch_operands = 2 : i64, tpu.core_type = #tpu.core_type<tc>, window_params = [{transform_indices = @transform_0, window_bounds = array<i64: 1, 8, 32>}, {pipeline_mode = #tpu.pipeline_mode<synchronous>, transform_indices = @transform_1, window_bounds = array<i64: 1, 8, 32>}, {pipeline_mode = #tpu.pipeline_mode<synchronous>, transform_indices = @transform_2, window_bounds = array<i64: 32, 32>}, {pipeline_mode = #tpu.pipeline_mode<synchronous>, transform_indices = @transform_3, window_bounds = array<i64: 32, 32>}, {pipeline_mode = #tpu.pipeline_mode<synchronous>, transform_indices = @transform_4, window_bounds = array<i64: 32, 32>}, {pipeline_mode = #tpu.pipeline_mode<synchronous>, transform_indices = @transform_5, window_bounds = array<i64: 32, 32>}, {pipeline_mode = #tpu.pipeline_mode<synchronous>, transform_indices = @transform_6, window_bounds = array<i64: 1, 32>}, {pipeline_mode = #tpu.pipeline_mode<synchronous>, transform_indices = @transform_7, window_bounds = array<i64: 1, 32>}, {pipeline_mode = #tpu.pipeline_mode<synchronous>, transform_indices = @transform_8, window_bounds = array<i64: 1, 32>}, {pipeline_mode = #tpu.pipeline_mode<synchronous>, transform_indices = @transform_9, window_bounds = array<i64: 1, 32>}, {pipeline_mode = #tpu.pipeline_mode<synchronous>, transform_indices = @transform_10, window_bounds = array<i64: 1, 32>}, {pipeline_mode = #tpu.pipeline_mode<synchronous>, transform_indices = @transform_11, window_bounds = array<i64: 1, 32>}, {transform_indices = @transform_12, window_bounds = array<i64: 1, 8, 32>}]} {
    %c0_i32 = arith.constant 0 : i32
    %0 = arith.cmpi eq, %arg1, %c0_i32 : i32
    %1 = arith.extui %0 : i1 to i32
    %c0_i32_0 = arith.constant 0 : i32
    %2 = arith.cmpi ne, %1, %c0_i32_0 : i32
    scf.if %2 {
      %c0_35 = arith.constant 0 : index
      %c0_36 = arith.constant 0 : index
      %c0_37 = arith.constant 0 : index
      %62 = vector.load %arg3[%c0_35, %c0_36, %c0_37] : memref<1x8x32xf32, #tpu.memory_space<vmem>>, vector<1x8x32xf32>
      %63 = vector.shape_cast %62 : vector<1x8x32xf32> to vector<8x32xf32>
      %c0_38 = arith.constant 0 : index
      %c0_39 = arith.constant 0 : index
      %64 = vector.load %arg5[%c0_38, %c0_39] : memref<32x32xf32, #tpu.memory_space<vmem>>, vector<32x32xf32>
      %cst_40 = arith.constant dense<0.000000e+00> : vector<8x32xf32>
      %65 = tpu.matmul %63, %64, %cst_40 {dimension_numbers = #tpu.dot_dimension_numbers<[1], [0], [0], [1], [0, 0, 1, 1], [], []>} : vector<8x32xf32>, vector<32x32xf32>, vector<8x32xf32> -> vector<8x32xf32>
      %c0_41 = arith.constant 0 : index
      %c0_42 = arith.constant 0 : index
      %66 = vector.load %arg9[%c0_41, %c0_42] : memref<1x32xf32, #tpu.memory_space<vmem>>, vector<1x32xf32>
      %67 = vector.broadcast %66 : vector<1x32xf32> to vector<8x32xf32>
      %68 = arith.addf %65, %67 : vector<8x32xf32>
      %c0_43 = arith.constant 0 : index
      %c0_44 = arith.constant 0 : index
      %69 = vector.load %arg6[%c0_43, %c0_44] : memref<32x32xf32, #tpu.memory_space<vmem>>, vector<32x32xf32>
      %cst_45 = arith.constant dense<0.000000e+00> : vector<8x32xf32>
      %70 = tpu.matmul %63, %69, %cst_45 {dimension_numbers = #tpu.dot_dimension_numbers<[1], [0], [0], [1], [0, 0, 1, 1], [], []>} : vector<8x32xf32>, vector<32x32xf32>, vector<8x32xf32> -> vector<8x32xf32>
      %c0_46 = arith.constant 0 : index
      %c0_47 = arith.constant 0 : index
      %71 = vector.load %arg10[%c0_46, %c0_47] : memref<1x32xf32, #tpu.memory_space<vmem>>, vector<1x32xf32>
      %72 = vector.broadcast %71 : vector<1x32xf32> to vector<8x32xf32>
      %73 = arith.addf %70, %72 : vector<8x32xf32>
      %74 = vector.shape_cast %68 : vector<8x32xf32> to vector<8x4x8xf32>
      %75 = tpu.transpose %74, [1, 0, 2] : vector<8x4x8xf32> -> vector<4x8x8xf32>
      %c0_48 = arith.constant 0 : index
      %c0_49 = arith.constant 0 : index
      %c0_50 = arith.constant 0 : index
      %76 = vector.load %arg15[%c0_48, %c0_49, %c0_50] : memref<4x8x8xf32, #tpu.memory_space<vmem>>, vector<4x8x8xf32>
      tpu.vector_store %arg15[%c0_48, %c0_49, %c0_50], %75 {strides = array<i32>} : memref<4x8x8xf32, #tpu.memory_space<vmem>>, vector<4x8x8xf32>,
      %77 = vector.shape_cast %73 : vector<8x32xf32> to vector<8x4x8xf32>
      %78 = tpu.transpose %77, [1, 0, 2] : vector<8x4x8xf32> -> vector<4x8x8xf32>
      %c0_51 = arith.constant 0 : index
      %c0_52 = arith.constant 0 : index
      %c0_53 = arith.constant 0 : index
      %79 = vector.load %arg16[%c0_51, %c0_52, %c0_53] : memref<4x8x8xf32, #tpu.memory_space<vmem>>, vector<4x8x8xf32>
      tpu.vector_store %arg16[%c0_51, %c0_52, %c0_53], %78 {strides = array<i32>} : memref<4x8x8xf32, #tpu.memory_space<vmem>>, vector<4x8x8xf32>,
    } else {
    }
    %c0 = arith.constant 0 : index
    %c0_1 = arith.constant 0 : index
    %c0_2 = arith.constant 0 : index
    %3 = vector.load %arg2[%c0, %c0_1, %c0_2] : memref<1x8x32xf32, #tpu.memory_space<vmem>>, vector<1x8x32xf32>
    %4 = vector.shape_cast %3 : vector<1x8x32xf32> to vector<8x32xf32>
    %c0_3 = arith.constant 0 : index
    %c0_4 = arith.constant 0 : index
    %5 = vector.load %arg4[%c0_3, %c0_4] : memref<32x32xf32, #tpu.memory_space<vmem>>, vector<32x32xf32>
    %cst = arith.constant dense<0.000000e+00> : vector<8x32xf32>
    %6 = tpu.matmul %4, %5, %cst {dimension_numbers = #tpu.dot_dimension_numbers<[1], [0], [0], [1], [0, 0, 1, 1], [], []>} : vector<8x32xf32>, vector<32x32xf32>, vector<8x32xf32> -> vector<8x32xf32>
    %c0_5 = arith.constant 0 : index
    %c0_6 = arith.constant 0 : index
    %7 = vector.load %arg8[%c0_5, %c0_6] : memref<1x32xf32, #tpu.memory_space<vmem>>, vector<1x32xf32>
    %8 = vector.broadcast %7 : vector<1x32xf32> to vector<8x32xf32>
    %9 = arith.addf %6, %8 : vector<8x32xf32>
    %cst_7 = arith.constant 0.353553385 : f32
    %10 = vector.broadcast %cst_7 : f32 to vector<8x32xf32>
    %11 = arith.mulf %9, %10 : vector<8x32xf32>
    %12 = vector.shape_cast %11 : vector<8x32xf32> to vector<8x4x8xf32>
    %13 = tpu.transpose %12, [1, 0, 2] : vector<8x4x8xf32> -> vector<4x8x8xf32>
    %c0_8 = arith.constant 0 : index
    %c0_9 = arith.constant 0 : index
    %c0_10 = arith.constant 0 : index
    %14 = vector.load %arg15[%c0_8, %c0_9, %c0_10] : memref<4x8x8xf32, #tpu.memory_space<vmem>>, vector<4x8x8xf32>
    %c0_11 = arith.constant 0 : index
    %c0_12 = arith.constant 0 : index
    %c0_13 = arith.constant 0 : index
    %15 = vector.load %arg16[%c0_11, %c0_12, %c0_13] : memref<4x8x8xf32, #tpu.memory_space<vmem>>, vector<4x8x8xf32>
    "tpu.trace_start"() <{level = 10 : i32, message = "hqd,hkd->hqk"}> : () -> ()
    %cst_14 = arith.constant dense<0.000000e+00> : vector<4x8x8xf32>
    %16 = tpu.matmul %13, %14, %cst_14 {dimension_numbers = #tpu.dot_dimension_numbers<[2], [2], [1], [1], [0, 0, 0, 1, 1, 1], [0], [0]>} : vector<4x8x8xf32>, vector<4x8x8xf32>, vector<4x8x8xf32> -> vector<4x8x8xf32>
    "tpu.trace_stop"() : () -> ()
    %cst_15 = arith.constant dense<0xFF800000> : vector<4x8xf32>
    %17 = vector.multi_reduction <maximumf>, %16, %cst_15 [2] : vector<4x8x8xf32> to vector<4x8xf32>
    %18 = vector.shape_cast %17 : vector<4x8xf32> to vector<4x8x1xf32>
    %19 = vector.broadcast %18 : vector<4x8x1xf32> to vector<4x8x8xf32>
    %20 = arith.subf %16, %19 : vector<4x8x8xf32>
    %21 = math.exp %20 : vector<4x8x8xf32>
    %cst_16 = arith.constant dense<0.000000e+00> : vector<4x8xf32>
    %22 = vector.multi_reduction <add>, %21, %cst_16 [2] : vector<4x8x8xf32> to vector<4x8xf32>
    %23 = vector.shape_cast %22 : vector<4x8xf32> to vector<4x8x1xf32>
    "tpu.trace_start"() <{level = 10 : i32, message = "hqk,hkd->hqd"}> : () -> ()
    %cst_17 = arith.constant dense<0.000000e+00> : vector<4x8x8xf32>
    %24 = tpu.matmul %21, %15, %cst_17 {dimension_numbers = #tpu.dot_dimension_numbers<[2], [1], [1], [2], [0, 0, 0, 1, 1, 2], [0], [0]>} : vector<4x8x8xf32>, vector<4x8x8xf32>, vector<4x8x8xf32> -> vector<4x8x8xf32>
    "tpu.trace_stop"() : () -> ()
    %25 = vector.broadcast %23 : vector<4x8x1xf32> to vector<4x8x8xf32>
    %26 = arith.divf %24, %25 : vector<4x8x8xf32>
    %27 = tpu.transpose %26, [1, 0, 2] : vector<4x8x8xf32> -> vector<8x4x8xf32>
    %28 = vector.shape_cast %27 : vector<8x4x8xf32> to vector<8x32xf32>
    %c0_18 = arith.constant 0 : index
    %c0_19 = arith.constant 0 : index
    %29 = vector.load %arg7[%c0_18, %c0_19] : memref<32x32xf32, #tpu.memory_space<vmem>>, vector<32x32xf32>
    %cst_20 = arith.constant dense<0.000000e+00> : vector<8x32xf32>
    %30 = tpu.matmul %28, %29, %cst_20 {dimension_numbers = #tpu.dot_dimension_numbers<[1], [0], [0], [1], [0, 0, 1, 1], [], []>} : vector<8x32xf32>, vector<32x32xf32>, vector<8x32xf32> -> vector<8x32xf32>
    %c0_21 = arith.constant 0 : index
    %c0_22 = arith.constant 0 : index
    %31 = vector.load %arg11[%c0_21, %c0_22] : memref<1x32xf32, #tpu.memory_space<vmem>>, vector<1x32xf32>
    %32 = vector.broadcast %31 : vector<1x32xf32> to vector<8x32xf32>
    %33 = arith.addf %30, %32 : vector<8x32xf32>
    %34 = arith.addf %4, %33 : vector<8x32xf32>
    %c0_23 = arith.constant 0 : index
    %c0_24 = arith.constant 0 : index
    %35 = vector.load %arg12[%c0_23, %c0_24] : memref<1x32xf32, #tpu.memory_space<vmem>>, vector<1x32xf32>
    %c0_25 = arith.constant 0 : index
    %c0_26 = arith.constant 0 : index
    %36 = vector.load %arg13[%c0_25, %c0_26] : memref<1x32xf32, #tpu.memory_space<vmem>>, vector<1x32xf32>
    %cst_27 = arith.constant dense<0.000000e+00> : vector<8xf32>
    %37 = vector.multi_reduction <add>, %34, %cst_27 [1] : vector<8x32xf32> to vector<8xf32>
    %38 = vector.shape_cast %37 : vector<8xf32> to vector<8x1xf32>
    %cst_28 = arith.constant 3.200000e+01 : f32
    %39 = vector.broadcast %cst_28 : f32 to vector<8x1xf32>
    %40 = arith.divf %38, %39 : vector<8x1xf32>
    %41 = arith.mulf %34, %34 : vector<8x32xf32>
    %cst_29 = arith.constant dense<0.000000e+00> : vector<8xf32>
    %42 = vector.multi_reduction <add>, %41, %cst_29 [1] : vector<8x32xf32> to vector<8xf32>
    %43 = vector.shape_cast %42 : vector<8xf32> to vector<8x1xf32>
    %cst_30 = arith.constant 3.200000e+01 : f32
    %44 = vector.broadcast %cst_30 : f32 to vector<8x1xf32>
    %45 = arith.divf %43, %44 : vector<8x1xf32>
    %46 = arith.mulf %40, %40 : vector<8x1xf32>
    %47 = arith.subf %45, %46 : vector<8x1xf32>
    %48 = vector.broadcast %40 : vector<8x1xf32> to vector<8x32xf32>
    %49 = arith.subf %34, %48 : vector<8x32xf32>
    %cst_31 = arith.constant 9.99999974E-6 : f32
    %50 = vector.broadcast %cst_31 : f32 to vector<8x1xf32>
    %51 = arith.addf %47, %50 : vector<8x1xf32>
    %52 = math.rsqrt %51 : vector<8x1xf32>
    %53 = vector.broadcast %52 : vector<8x1xf32> to vector<8x32xf32>
    %54 = arith.mulf %49, %53 : vector<8x32xf32>
    %55 = vector.broadcast %35 : vector<1x32xf32> to vector<8x32xf32>
    %56 = arith.mulf %54, %55 : vector<8x32xf32>
    %57 = vector.broadcast %36 : vector<1x32xf32> to vector<8x32xf32>
    %58 = arith.addf %56, %57 : vector<8x32xf32>
    %c0_32 = arith.constant 0 : index
    %c0_33 = arith.constant 0 : index
    %c0_34 = arith.constant 0 : index
    %59 = vector.load %arg14[%c0_32, %c0_33, %c0_34] : memref<1x8x32xf32, #tpu.memory_space<vmem>>, vector<1x8x32xf32>
    %60 = vector.shape_cast %59 : vector<1x8x32xf32> to vector<8x32xf32>
    %61 = vector.shape_cast %58 : vector<8x32xf32> to vector<1x8x32xf32>
    tpu.vector_store %arg14[%c0_32, %c0_33, %c0_34], %61 {strides = array<i32>} : memref<1x8x32xf32, #tpu.memory_space<vmem>>, vector<1x8x32xf32>,
    return
  }
  func.func @transform_0(%arg0: i32, %arg1: i32) -> (i32, i32, i32) {
    %c0_i32 = arith.constant 0 : i32
    %c0_i32_0 = arith.constant 0 : i32
    return %arg0, %arg1, %c0_i32 : i32, i32, i32
  }
  func.func @transform_1(%arg0: i32, %arg1: i32) -> (i32, i32, i32) {
    %c0_i32 = arith.constant 0 : i32
    %c0_i32_0 = arith.constant 0 : i32
    %c0_i32_1 = arith.constant 0 : i32
    return %arg0, %c0_i32, %c0_i32_0 : i32, i32, i32
  }
  func.func @transform_2(%arg0: i32, %arg1: i32) -> (i32, i32) {
    %c0_i32 = arith.constant 0 : i32
    %c0_i32_0 = arith.constant 0 : i32
    %c0_i32_1 = arith.constant 0 : i32
    return %c0_i32, %c0_i32_0 : i32, i32
  }
  func.func @transform_3(%arg0: i32, %arg1: i32) -> (i32, i32) {
    %c0_i32 = arith.constant 0 : i32
    %c0_i32_0 = arith.constant 0 : i32
    %c0_i32_1 = arith.constant 0 : i32
    return %c0_i32, %c0_i32_0 : i32, i32
  }
  func.func @transform_4(%arg0: i32, %arg1: i32) -> (i32, i32) {
    %c0_i32 = arith.constant 0 : i32
    %c0_i32_0 = arith.constant 0 : i32
    %c0_i32_1 = arith.constant 0 : i32
    return %c0_i32, %c0_i32_0 : i32, i32
  }
  func.func @transform_5(%arg0: i32, %arg1: i32) -> (i32, i32) {
    %c0_i32 = arith.constant 0 : i32
    %c0_i32_0 = arith.constant 0 : i32
    %c0_i32_1 = arith.constant 0 : i32
    return %c0_i32, %c0_i32_0 : i32, i32
  }
  func.func @transform_6(%arg0: i32, %arg1: i32) -> (i32, i32) {
    %c0_i32 = arith.constant 0 : i32
    %c0_i32_0 = arith.constant 0 : i32
    %c0_i32_1 = arith.constant 0 : i32
    return %c0_i32, %c0_i32_0 : i32, i32
  }
  func.func @transform_7(%arg0: i32, %arg1: i32) -> (i32, i32) {
    %c0_i32 = arith.constant 0 : i32
    %c0_i32_0 = arith.constant 0 : i32
    %c0_i32_1 = arith.constant 0 : i32
    return %c0_i32, %c0_i32_0 : i32, i32
  }
  func.func @transform_8(%arg0: i32, %arg1: i32) -> (i32, i32) {
    %c0_i32 = arith.constant 0 : i32
    %c0_i32_0 = arith.constant 0 : i32
    %c0_i32_1 = arith.constant 0 : i32
    return %c0_i32, %c0_i32_0 : i32, i32
  }
  func.func @transform_9(%arg0: i32, %arg1: i32) -> (i32, i32) {
    %c0_i32 = arith.constant 0 : i32
    %c0_i32_0 = arith.constant 0 : i32
    %c0_i32_1 = arith.constant 0 : i32
    return %c0_i32, %c0_i32_0 : i32, i32
  }
  func.func @transform_10(%arg0: i32, %arg1: i32) -> (i32, i32) {
    %c0_i32 = arith.constant 0 : i32
    %c0_i32_0 = arith.constant 0 : i32
    %c0_i32_1 = arith.constant 0 : i32
    return %c0_i32, %c0_i32_0 : i32, i32
  }
  func.func @transform_11(%arg0: i32, %arg1: i32) -> (i32, i32) {
    %c0_i32 = arith.constant 0 : i32
    %c0_i32_0 = arith.constant 0 : i32
    %c0_i32_1 = arith.constant 0 : i32
    return %c0_i32, %c0_i32_0 : i32, i32
  }
  func.func @transform_12(%arg0: i32, %arg1: i32) -> (i32, i32, i32) {
    %c0_i32 = arith.constant 0 : i32
    %c0_i32_0 = arith.constant 0 : i32
    return %arg0, %arg1, %c0_i32 : i32, i32, i32
  }
}

</mosaic_0001>

<bundles_post_ra>
// kernel: tpu_custom_call.1
= control target key start
LH: loop header
LB: loop body
LE: loop exit
PB: predicated region body
PF: predicated region fallthrough
CT: control target
= control target key end

     0   :  { %s2644_s0 = inlined_call_operand.hbm [shape: f32[2,8,32], index: 0, kind: input, shape index: {}]   ;;  %s2645_s1 = inlined_call_operand.hbm [shape: f32[2,8,32], index: 1, kind: input, shape index: {}]   ;;  %s2646_s2 = inlined_call_operand.hbm [shape: f32[32,32], index: 2, kind: input, shape index: {}]   ;;  %s2647_s3 = inlined_call_operand.hbm [shape: f32[32,32], index: 3, kind: input, shape index: {}]   ;;  %s2648_s4 = inlined_call_operand.hbm [shape: f32[32,32], index: 4, kind: input, shape index: {}]   ;;  %s2649_s5 = inlined_call_operand.hbm [shape: f32[32,32], index: 5, kind: input, shape index: {}]   ;;  %s2650_s6 = inlined_call_operand.vmem [shape: f32[1,32], index: 6, kind: input, shape index: {}]   ;;  %s2651_s7 = inlined_call_operand.vmem [shape: f32[1,32], index: 7, kind: input, shape index: {}]   ;;  %s2652_s8 = inlined_call_operand.vmem [shape: f32[1,32], index: 8, kind: input, shape index: {}]   ;;  %s2653_s9 = inlined_call_operand.vmem [shape: f32[1,32], index: 9, kind: input, shape index: {}]   ;;  %s2654_s10 = inlined_call_operand.vmem [shape: f32[1,32], index: 10, kind: input, shape index: {}]   ;;  %s2655_s11 = inlined_call_operand.vmem [shape: f32[1,32], index: 11, kind: input, shape index: {}]   ;;  %s2656_s12 = inlined_call_operand.hbm [shape: f32[2,8,32], index: 12, kind: output, shape index: {}]  }
   0x1   :  { %2664 = sst [smem:[#allocation25_spill]] %s2650_s6 }
   0x2   :  { %2665 = sst [smem:[#allocation26_spill]] %s2652_s8 }
   0x3   :  { %2666 = sst [smem:[#allocation27_spill]] %s2653_s9 }
   0x4   :  { %2667 = sst [smem:[#allocation28_spill]] %s2654_s10 }
   0x5   :  { %2668 = sst [smem:[#allocation29_spill]] %s2655_s11 }
   0x6   :  { %2669 = sst [smem:[#allocation30_spill]] %s2656_s12 }
   0x7   :  { %17 = vsyncpa [#allocation5], 0 }
   0x8   :  { %19 = vsyncpa [#allocation5 + $0x1], 0 }
   0x9   :  { %20 = vsyncpa [#allocation8], 0 }
   0xa   :  { %21 = vsyncpa [#allocation11], 0 }
   0xb   :  { %22 = vsyncpa [#allocation14], 0 }
   0xc   :  { %23 = vsyncpa [#allocation6], 0 }
   0xd   :  { %25 = vsyncpa [#allocation6 + $0x1], 0  ;;  %s2200_s21 = smov 0   ;;  %s2202_s22 = smov 0  }
   0xe   :  { %s2204_s23 = smov 0   ;;  %s2206_s24 = smov 0  }
   0xf   :  { %s2208_s25 = smov 0   ;;  %s2210_s26 = smov 0  }
  0x10 LB: > { %2670 = sst [smem:[#allocation22_spill]] %s2097_s21  ;;  %s1655_s27 = sadd.s32 4294967295, %s2117_s26   ;;  %s2117_s26 = sphi %s2210_s26, %s31_s26   ;;  %s2113_s25 = sphi %s2208_s25, %s2700_s25   ;;  %s2109_s24 = sphi %s2206_s24, %s2699_s24   ;;  %s2105_s23 = sphi %s2204_s23, %s2698_s23   ;;  %s2101_s22 = sphi %s2202_s22, %s2697_s22   ;;  %s2097_s21 = sphi %s2200_s21, %s2696_s21  }
  0x11   : > { %2671 = sst [smem:[#allocation23_spill]] %s2109_s24  ;;  %s1656_s28 = sadd.s32 4294967294, %s2117_s26  }
  0x12   : > { %p65_p0 = scmp.ne.s32.totalorder %s2101_s22, %s2097_s21  ;;  %p2234_p1 = scmp.eq.s32.totalorder %s1655_s27, 0 }
  0x13   : > { %p2238_p2 = scmp.eq.s32.totalorder %s1655_s27, 1  ;;  %p333_p3 = scmp.eq.s32.totalorder %s1656_s28, 1 }
  0x14   : > { %s2672_s29 = scalar_select %p2234_p1, 1, 0 }
  0x15   : > { %p2244_p4 = por %p2234_p1, %p65_p0  ;;  %p1657_p5 = scmp.ge.s32.totalorder %s2117_s26, 1 }
  0x16   : > { %p2249_p6 = por %p333_p3, %p65_p0  ;;  %p340_p7 = scmp.lt.s32.totalorder %s2117_s26, 3 }
  0x17   : > { %s2659_s15 = sshll.u32 %s2109_s24, 3  ;;  %s2119_s27 = smov [#allocation7]  }
  0x18   : > { %s2675_s14 = scalar_select %p2249_p6, 1, 0 }
  0x19   : > { %p2255_p8 = pnand %p1657_p5, %p340_p7  ;;  %s352_s19 = scalar_lea.hbm %s2645_s1, %s2659_s15 }
  0x1a   : > { %2676 = sst [smem:[#allocation24_spill]] %s2675_s14  ;;  %s354_s20 = sshll.u32 %s352_s19, 4  ;;  %s355_s20 = int_to_ptr.hbm [resolvable:$true] %s354_s20 }
  0x1b   : > { %s356_s28 = sshll.u32 %s2119_s27, 4  ;;  %p1715_p9 = pneg %p2255_p8  ;;  %s357_s28 = int_to_ptr.vmem [resolvable:$true] %s356_s28 }
  0x1c   : > { %p1663_p12 = scmp.ge.s32.totalorder %s2117_s26, 2  ;;  %s1839_s17 = sshra.s32 %s355_s20, 4  ;;  %s1840_s17 = int_to_ptr.hbm [resolvable:$true] %s1839_s17 }
  0x1d   : > { %p2268_p10 = pnand %p1715_p9, %p2244_p4  ;;  %p2274_p11 = pnand %p1715_p9, %p2234_p1 }
  0x1e   : > { %s1841_s18 = scalar_lea.hbm %s1840_s17, 8  ;;  %s1846_s15 = scalar_lea.hbm %s2645_s1, 16 }
  0x1f   : > { %p1842_p13 = scmp.ne.s32.totalorder %s1840_s17, %s1841_s18  ;;  %p1843_p0 = pneg %p2268_p10 }
  0x20   : > { %p1847_p7 = scmp.lt.s32.totalorder %s1840_s17, %s2645_s1  ;;  %p1848_p9 = scmp.lt.s32.totalorder %s1846_s15, %s1841_s18 }
  0x21   : > { %p1844_p3 = pnand %p1843_p0, %p1842_p13 }
  0x22   : > { %p1849_p6 = por %p1848_p9, %p1847_p7 }
  0x23   : > { %p1845_p5 = pneg %p1844_p3 }
  0x25   : > { %p1850_p1 = pnand %p1849_p6, %p1845_p5 }
  0x27   : > { %1853 = shalt.err (!%p1850_p1)
}
  0x28   : > { %1718 = dma.hbm_to_vmem [thread:$0]  (!%p2268_p10), %s355_s20, 128, %s357_s28, [#allocation8]  }
  0x29   : > { %s379_s9 = sshll.u32 %s2647_s3, 4  ;;  %s2120_s19 = smov [#allocation10]   ;;  %s380_s9 = int_to_ptr.hbm [resolvable:$true] %s379_s9 }
  0x2a   : > { %s381_s27 = sshll.u32 %s2120_s19, 4  ;;  %s365_s11 = sshll.u32 %s2646_s2, 4  ;;  %s382_s27 = int_to_ptr.vmem [resolvable:$true] %s381_s27  ;;  %s366_s11 = int_to_ptr.hbm [resolvable:$true] %s365_s11 }
  0x2b   : > { %s2121_s12 = smov 128   ;;  %s2122_s15 = smov 8  }
  0x2c   : > { %1724 = dma.hbm_to_vmem [thread:$0]  (!%p2274_p11), %s380_s9, 512, %s382_s27, [#allocation11], %s2121_s12, %s2121_s12, %s2122_s15  }
  0x2d   : > { %s393_s10 = sshll.u32 %s2648_s4, 4  ;;  %s2123_s24 = smov [#allocation9]   ;;  %s394_s10 = int_to_ptr.hbm [resolvable:$true] %s393_s10 }
  0x2e   : > { %s367_s28 = sshll.u32 %s2123_s24, 4  ;;  %s2124_s6 = smov [#allocation12]   ;;  %s368_s28 = int_to_ptr.vmem [resolvable:$true] %s367_s28 }
  0x2f   : > { %1721 = dma.hbm_to_vmem [thread:$0]  (!%p2274_p11), %s366_s11, 512, %s368_s28, [#allocation8], %s2121_s12, %s2121_s12, %s2122_s15  }
  0x30   : > { %s395_s8 = sshll.u32 %s2124_s6, 4  ;;  %s407_s18 = sshll.u32 %s2649_s5, 4  ;;  %s396_s8 = int_to_ptr.vmem [resolvable:$true] %s395_s8  ;;  %s408_s18 = int_to_ptr.hbm [resolvable:$true] %s407_s18 }
  0x31   : > { %1727 = dma.hbm_to_vmem [thread:$0]  (!%p2274_p11), %s394_s10, 512, %s396_s8, [#allocation11], %s2121_s12, %s2121_s12, %s2122_s15  }
  0x32   : > { %s2125_s19 = smov [#allocation13]   ;;  %s43_s11 = sadd.s32 1, %s2113_s25 }
  0x33   : > { %s409_s27 = sshll.u32 %s2125_s19, 4  ;;  %p45_p1 = scmp.ge.s32.totalorder %s43_s11, 2  ;;  %s410_s27 = int_to_ptr.vmem [resolvable:$true] %s409_s27 }
  0x34   : > { %1730 = dma.hbm_to_vmem [thread:$0]  (!%p2274_p11), %s408_s18, 512, %s410_s27, [#allocation14], %s2121_s12, %s2121_s12, %s2122_s15  }
  0x35   : > { %s52_s14 = sadd.s32 1, %s2105_s23  ;;  %p59_p6 = scmp.ne.s32.totalorder %s2105_s23, %s2101_s22 }
  0x36   : > { %p60_p10 = scmp.eq.s32.totalorder %s2117_s26, 0  ;;  %s2702_s11 = smov (%p45_p1, %s43_s11), 0 }
  0x37   : > { %p2322_p0 = por %p2238_p2, %p59_p6  ;;  %s47_s21 = ssub.s32 %s2113_s25, %s2702_s11 }
  0x38   : > { %p2316_p13 = por %p60_p10, %p59_p6  ;;  %p1743_p11 = scmp.lt.s32.totalorder %s2117_s26, 2 }
  0x39   : > { %p50_p3 = scmp.eq.s32.totalorder %s47_s21, 0  ;;  %s441_s12 = sand.u32 1, %s2105_s23  }
  0x3a   : > { %s1664_s15 = sshll.u32 %s441_s12, 3  ;;  %s1665_s28 = sshll.u32 %s2113_s25, 3 }
  0x3b   : > { %s2331_s24 = scalar_select %p50_p3, %s2105_s23, %s52_s14  }
  0x3c   : > { %s450_s17 = scalar_lea.hbm %s2644_s0, %s1665_s28  ;;  %s445_s9 = scalar_lea.vmem [#allocation4], %s1664_s15 }
  0x3d   : > { %s454_s18 = sshll.u32 %s445_s9, 4  ;;  %s452_s30 = sshll.u32 %s450_s17, 4  ;;  %s455_s18 = int_to_ptr.vmem [resolvable:$true] %s454_s18  ;;  %s453_s30 = int_to_ptr.hbm [resolvable:$true] %s452_s30 }
  0x3e   : > { %p1732_p2 = pnand %p1743_p11, %p2316_p13  ;;  %s442_s19 = scalar_lea.sflag [#allocation5], %s441_s12 }
  0x3f   : > { %463 = sbr.rel (%p2255_p8) target bundleno = 1207 (0x4b7), region = 68  ;;  %s2342_s27 = sand.u32 (!%p2255_p8), 1, %s2101_s22  }
  0x40   : > { %1734 = dma.hbm_to_vmem [thread:$0]  (!%p1732_p2), %s453_s30, 128, %s455_s18, %s442_s19  }
  0x41   : > { %s1667_s14 = sshll.u32 (!%p2255_p8), %s2342_s27, 3  ;;  %s466_s21 = scalar_lea.sflag (!%p2255_p8), [#allocation5], %s2342_s27 }
  0x42   : > { %s469_s15 = scalar_lea.vmem (!%p2255_p8), [#allocation4], %s1667_s14 }
  0x44   : > { %2072 = dma.done.wait (%p2244_p4), %s466_s21, 128  }
  0x45   : > { %2074 = vsyncadd (%p2244_p4), %s466_s21, 4294967168 }
  0x46   : > { %2076 = dma.done.wait (%p2244_p4), [#allocation8], 128  }
  0x47   : > { %2078 = vsyncadd (%p2244_p4), [#allocation8], 4294967168  ;;  %p2682_p8 = scmp.ne.s32.totalorder %s2672_s29, 0 }
  0x49   : > { %2080 = dma.done.wait (%p2682_p8), [#allocation8], 512  }
  0x4a   : > { %2082 = vsyncadd (%p2682_p8), [#allocation8], 4294966784 }
  0x4b   : > { %2084 = dma.done.wait (%p2682_p8), [#allocation11], 1024  }
  0x4c   : > { %2086 = vsyncadd (%p2682_p8), [#allocation11], 4294966272 }
  0x4d   : > { %2088 = dma.done.wait (%p2682_p8), [#allocation14], 512  }
  0x4e   : > { %2090 = vsyncadd (%p2682_p8), [#allocation14], 4294966784  ;;  %v544_v0 = vld [vmem:[#allocation10 + $0x18] sm:$0xff]  ;;  %v543_v2 = vld [vmem:[#allocation10 + $0x10] sm:$0xff]  ;;  %vm549_vm0 = vcmask 261120   ;;  %s2126_s16 = smov 104  }
  0x4f   : > { %v855_v1 = vld [vmem:[#allocation9 + $0x18] sm:$0xff]  ;;  %565 = vmatpush.msra.mxu0 %v544_v0  ;;  %v854_v3 = vld [vmem:[#allocation9 + $0x10] sm:$0xff]  ;;  %v542_v4 = vld [vmem:[#allocation10 + $0x8] sm:$0xff]  ;;  %s2127_s20 = smov 120   ;;  %s2683_s6 = sld [smem:[#allocation25_spill]]  ;;  %vm612_vm1 = vcmask 1047556  }
  0x50   : > { %876 = vmatpush.msra.mxu2 %v855_v1  ;;  %v853_v5 = vld [vmem:[#allocation9 + $0x8] sm:$0xff]  ;;  %v541_v6 = vld [vmem:[#allocation10] sm:$0xff]  ;;  %v576_v7 = vld [vmem:[#allocation12 + $0x18] sm:$0xff]  ;;  %s2128_s8 = smov 112   ;;  %s2684_s18 = sld [smem:[#allocation26_spill]]  ;;  %vm722_vm2 = vcmask 64512  }
  0x51   : > { %566 = vmatpush.msra.mxu0 %v543_v2  ;;  %v575_v8 = vld [vmem:[#allocation12 + $0x10] sm:$0xff]  ;;  %v852_v9 = vld [vmem:[#allocation9] sm:$0xff]  ;;  %v540_v10 = vld [vmem:[#allocation7] sm:$0xff]  ;;  %593 = vmatpush.msra.mxu1 %v576_v7  ;;  %v2129_v25 = vmov 1983009808   ;;  %s2131_s30 = smov 24  }
  0x52   : > { %877 = vmatpush.msra.mxu2 %v854_v3  ;;  %v2368_v11 = vld [vmem:[%s469_s15] sm:$0xff]  ;;  %v573_v13 = vld [vmem:[#allocation12] sm:$0xff]  ;;  %v617_v26 = vunpack.c.l.s4 %v2129_v25  ;;  %v2130_v38 = vmov 1934713408   ;;  %s2132_s19 = smov 16   ;;  %s2133_s21 = smov 8  }
  0x53   : > { %567 = vmatpush.msra.mxu0 %v542_v4  ;;  %594 = vmatpush.msra.mxu1 %v575_v8  ;;  %v574_v12 = vld [vmem:[#allocation12 + $0x8] sm:$0xff]  ;;  %v641_v39 = vunpack.c.l.s4 %v2130_v38  ;;  %s2687_s13 = sld [smem:[#allocation27_spill]]  ;;  %s535_s15 = scalar_lea.vmem [#allocation15], %s1667_s14 }
  0x54   : > { %878 = vmatpush.msra.mxu2 %v853_v5  ;;  %v1813_v14 = vld [vmem:[%s2651_s7] ss:$0 sm:$0xff]  ;;  %v2388_v33 = vunpack.c.0.s8 %v617_v26  ;;  %s2689_s28 = sld [smem:[#allocation28_spill]]  ;;  %s1522_s29 = sshll.u32 %s535_s15, 4  ;;  %s1523_s29 = int_to_ptr.vmem [resolvable:$true] %s1522_s29 }
  0x55   : > { %568 = vmatpush.msra.mxu0 %v541_v6  ;;  %595 = vmatpush.msra.mxu1 %v574_v12  ;;  %v1814_v17 = vld [vmem:[%s2683_s6] ss:$0 sm:$0xff]  ;;  %v2398_v48 = vunpack.c.0.s8 %v641_v39  ;;  %s2691_s9 = sld [smem:[#allocation30_spill]] }
  0x56   : > { %879 = vmatpush.msra.mxu2 %v852_v9  ;;  %1673 = vmatmul.msk.f32.vlgmr.msra.gmra.mxu0 %vm549_vm0, %v540_v10  ;;  %v1815_v21 = vld [vmem:[%s2684_s18] ss:$0 sm:$0xff] }
  0x57   : > { %1675 = vmatmul.msk.f32.vlgmr.msra.gmra.mxu2 %vm549_vm0, %v2368_v11  ;;  %596 = vmatpush.msra.mxu1 %v573_v13 }
  0x58   : > { %1674 = vmatmul.msk.f32.vlgmr.msra.gmra.mxu1 %vm549_vm0, %v540_v10 }
  0x5b   : > { %s2039_s14 = scalar_lea.hbm %s2691_s9, 16 }
  0xd3   : > { %v570_v15 = vpop.f32.mrf.mxu0 }
  0xd4   : > { %v571_v16 = vadd.f32 %v1813_v14, %v570_v15 }
  0xd5   : > { %v598_v22 = vpop.f32.mrf.mxu1 }
  0xd6   : > { %608 = vrot.lane.b32.xlu1 %v571_v16, %s2126_s16  ;;  %602 = vrot.lane.b32.xlu0 %v571_v16, %s2127_s20  ;;  %v2383_v23 = vadd.f32 %v1815_v21, %v598_v22  ;;  %v614_v46 = vrot.slane %v571_v16, 4 }
  0xda   : > { %v881_v18 = vpop.f32.mrf.mxu2 }
  0xdb   : > { %v882_v19 = vadd.f32 %v1814_v17, %v881_v18 }
  0xdd   : > { %v884_v20 = vmul.f32 0.35355338, %v882_v19 }
  0xde   : > { %605 = vrot.lane.b32.xlu0 %v571_v16, %s2128_s8 }
  0xdf   : > { %889 = vrot.lane.b32.xlu2 %v884_v20, %s2128_s8  ;;  %886 = vrot.lane.b32.xlu1 %v884_v20, %s2127_s20  ;;  %v898_v31 = vrot.slane %v884_v20, 4 }
  0xe6   : > { %728 = vrot.lane.b32.xlu0 %v2383_v23, %s2127_s20 }
  0xe7   : > { %892 = vrot.lane.b32.xlu2 %v884_v20, %s2126_s16  ;;  %731 = vrot.lane.b32.xlu1 %v2383_v23, %s2128_s8 }
  0xef   : > { %734 = vrot.lane.b32.xlu2 %v2383_v23, %s2126_s16  ;;  %s2688_s16 = sld [smem:[#allocation23_spill]] }
  0xf5   : > { %s2690_s6 = sshll.u32 %s2688_s16, 3  ;;  %s1509_s16 = scalar_lea.sflag [#allocation6], %s2342_s27 }
  0xf6   : > { %s1520_s18 = scalar_lea.hbm %s2691_s9, %s2690_s6 }
 0x139   : > { %v890_v24 = vpop.permute.xlu2 %889 }
 0x13a   : > { %v895_v27 = vrot.slane %v890_v24, 4  ;;  %v899_v35 = vsel %vm612_vm1, %v890_v24, %v898_v31 }
 0x13b   : > { %v907_v42 = vperm.slane %v899_v35, %v2388_v33 }
 0x13c   : > { %v897_v34 = vsel %vm612_vm1, %v895_v27, %v884_v20 }
 0x13d   : > { %v903_v40 = vperm.slane %v897_v34, %v2388_v33  ;;  %v934_v56 = vrot.slane %v907_v42, 4 }
 0x13f   : > { %v922_v52 = vrot.slane %v903_v40, 4 }
 0x141   : > { %v893_v36 = vpop.permute.xlu2 %892 }
 0x142   : > { %v908_v43 = vrot.slane %v893_v36, 4 }
 0x148   : > { %v609_v28 = vpop.permute.xlu1 %608  ;;  %v603_v29 = vpop.permute.xlu0 %602 }
 0x149   : > { %v626_v30 = vrot.slane %v603_v29, 4  ;;  %v624_v32 = vrot.slane %v609_v28, 4 }
 0x14b   : > { %v627_v37 = vsel %vm612_vm1, %v609_v28, %v626_v30  ;;  %v625_v41 = vsel %vm612_vm1, %v624_v32, %v603_v29 }
 0x14c   : > { %v635_v44 = vperm.slane %v627_v37, %v2388_v33  ;;  %v631_v47 = vperm.slane %v625_v41, %v2388_v33 }
 0x14e   : > { %v648_v57 = vrot.slane %v635_v44, 4  ;;  %v636_v0 = vrot.slane %v631_v47, 4 }
 0x150   : > { %v606_v51 = vpop.permute.xlu0 %605 }
 0x151   : > { %v887_v45 = vpop.permute.xlu1 %886  ;;  %v611_v54 = vrot.slane %v606_v51, 4  ;;  %v615_v55 = vsel %vm612_vm1, %v606_v51, %v614_v46 }
 0x152   : > { %v909_v49 = vsel %vm612_vm1, %v908_v43, %v887_v45  ;;  %v910_v50 = vrot.slane %v887_v45, 4  ;;  %v623_v59 = vperm.slane %v615_v55, %v2388_v33 }
 0x153   : > { %v915_v53 = vperm.slane %v909_v49, %v2388_v33  ;;  %v613_v63 = vsel %vm612_vm1, %v611_v54, %v571_v16 }
 0x154   : > { %v911_v58 = vsel %vm612_vm1, %v893_v36, %v910_v50  ;;  %v619_v2 = vperm.slane %v613_v63, %v2388_v33  ;;  %v650_v3 = vrot.slane %v623_v59, 4  ;;  %v649_v7 = vsel %vm612_vm1, %v648_v57, %v623_v59 }
 0x155   : > { %v919_v60 = vperm.slane %v911_v58, %v2388_v33  ;;  %v920_v61 = vrot.slane %v915_v53, 4  ;;  %v923_v62 = vsel %vm612_vm1, %v915_v53, %v922_v52  ;;  %v655_v18 = vperm.slane %v649_v7, %v2398_v48 }
 0x156   : > { %v931_v1 = vperm.slane %v923_v62, %v2398_v48  ;;  %v637_v12 = vsel %vm612_vm1, %v636_v0, %v619_v2  ;;  %v638_v14 = vrot.slane %v619_v2, 4  ;;  %v651_v15 = vsel %vm612_vm1, %v635_v44, %v650_v3 }
 0x157   : > { %v921_v4 = vsel %vm612_vm1, %v920_v61, %v903_v40  ;;  %v932_v5 = vrot.slane %v919_v60, 4  ;;  %v935_v6 = vsel %vm612_vm1, %v919_v60, %v934_v56  ;;  %v643_v20 = vperm.slane %v637_v12, %v2398_v48 }
 0x158   : > { %v927_v8 = vperm.slane %v921_v4, %v2398_v48  ;;  %v943_v9 = vperm.slane %v935_v6, %v2398_v48  ;;  %v946_v10 = vrot.slane %v931_v1, 4  ;;  %v639_v19 = vsel %vm612_vm1, %v631_v47, %v638_v14 }
 0x159   : > { %v933_v13 = vsel %vm612_vm1, %v932_v5, %v907_v42  ;;  %v659_v21 = vperm.slane %v651_v15, %v2398_v48  ;;  %v647_v27 = vperm.slane %v639_v19, %v2398_v48  ;;  %v664_v30 = vrot.slane %v655_v18, 4 }
 0x15a   : > { %v939_v16 = vperm.slane %v933_v13, %v2398_v48  ;;  %v950_v17 = vrot.slane %v943_v9, 4  ;;  %v944_v22 = vrot.slane %v927_v8, 4  ;;  %v947_v24 = vsel %vm612_vm1, 0.0, %v946_v10 }
 0x15b   : > { %v952_v28 = vsel %vm612_vm1, %v946_v10, %v927_v8  ;;  %v666_v31 = vrot.slane %v659_v21, 4  ;;  %v957_v32 = vrot.slane %v947_v24, 4  ;;  %v660_v34 = vrot.slane %v643_v20, 4 }
 0x15c   : > { %v948_v25 = vrot.slane %v939_v16, 4  ;;  %v951_v26 = vsel %vm612_vm1, 0.0, %v950_v17  ;;  %v662_v35 = vrot.slane %v647_v27, 4  ;;  %v945_v37 = vsel %vm612_vm1, 0.0, %v944_v22 }
 0x15d   : > { %v968_v29 = vrot.slane %v951_v26, 4  ;;  %v963_v38 = vsel %vm612_vm1, %v950_v17, %v939_v16  ;;  %v667_v39 = vsel %vm612_vm1, 0.0, %v666_v31  ;;  %v679_v40 = vsel %vm612_vm1, %v666_v31, %v655_v18 }
 0x15e   : > { %v949_v36 = vsel %vm612_vm1, 0.0, %v948_v25  ;;  %v663_v41 = vsel %vm612_vm1, 0.0, %v662_v35  ;;  %v668_v42 = vsel %vm612_vm1, %v662_v35, %v643_v20  ;;  %v683_v43 = vperm.slane %v679_v40, %v2388_v33 }
 0x15f   : > { %v684_v44 = vrot.slane %v667_v39, 4  ;;  %v665_v45 = vsel %vm612_vm1, 0.0, %v664_v30  ;;  %v672_v46 = vperm.slane %v668_v42, %v2388_v33  ;;  %v673_v47 = vrot.slane %v663_v41, 4 }
 0x160   : > { %v969_v49 = vsel %vm612_vm1, %v968_v29, %v949_v36  ;;  %v661_v50 = vsel %vm612_vm1, 0.0, %v660_v34  ;;  %v704_v52 = vrot.slane %v683_v43, 4  ;;  %v967_v53 = vperm.slane %v963_v38, %v2388_v33 }
 0x161   : > { %v685_v51 = vsel %vm612_vm1, %v684_v44, %v665_v45  ;;  %v956_v54 = vperm.slane %v952_v28, %v2388_v33  ;;  %v674_v55 = vsel %vm612_vm1, %v673_v47, %v661_v50  ;;  %v692_v57 = vrot.slane %v672_v46, 4  ;;  %v729_v47 = vpop.permute.xlu0 %728 }
 0x162   : > { %v689_v56 = vperm.slane %v685_v51, %v2388_v33  ;;  %v678_v58 = vperm.slane %v674_v55, %v2388_v33  ;;  %v958_v59 = vsel %vm612_vm1, %v957_v32, %v945_v37  ;;  %v973_v60 = vperm.slane %v969_v49, %v2388_v33 }
 0x163   : > { %v988_v2 = vrot.slane %v967_v53, 4  ;;  %v962_v5 = vperm.slane %v958_v59, %v2388_v33  ;;  %v976_v6 = vrot.slane %v956_v54, 4  ;;  %v739_v44 = vrot.slane %v2383_v23, 4 }
 0x164   : > { %v702_v61 = vrot.slane %v689_v56, 4  ;;  %v705_v62 = vsel %vm612_vm1, %v689_v56, %v704_v52  ;;  %v690_v63 = vrot.slane %v678_v58, 4  ;;  %v693_v0 = vsel %vm612_vm1, %v678_v58, %v692_v57 }
 0x165   : > { %v713_v1 = vperm.slane %v705_v62, %v2398_v48  ;;  %v701_v3 = vperm.slane %v693_v0, %v2398_v48  ;;  %v986_v10 = vrot.slane %v973_v60, 4  ;;  %v989_v16 = vsel %vm612_vm1, %v973_v60, %v988_v2 }
 0x166   : > { %v703_v4 = vsel %vm612_vm1, %v702_v61, %v683_v43  ;;  %v691_v7 = vsel %vm612_vm1, %v690_v63, %v672_v46  ;;  %v977_v19 = vsel %vm612_vm1, %v962_v5, %v976_v6  ;;  %v997_v24 = vperm.slane %v989_v16, %v2398_v48  ;;  %v735_v43 = vpop.permute.xlu2 %734  ;;  %v732_v46 = vpop.permute.xlu1 %731 }
 0x167   : > { %v709_v8 = vperm.slane %v703_v4, %v2398_v48  ;;  %v718_v9 = vrot.slane %v713_v1, 4  ;;  %v697_v12 = vperm.slane %v691_v7, %v2398_v48  ;;  %v720_v13 = vrot.slane %v701_v3, 4 }
 0x168   : > { %v987_v21 = vsel %vm612_vm1, %v986_v10, %v967_v53  ;;  %v985_v25 = vperm.slane %v977_v19, %v2398_v48  ;;  %v974_v26 = vrot.slane %v962_v5, 4  ;;  %v1002_v28 = vrot.slane %v997_v24, 4 }
 0x169   : > { %v714_v14 = vrot.slane %v709_v8, 4  ;;  %v719_v15 = vsel %vm612_vm1, %v718_v9, %v701_v3  ;;  %v716_v17 = vrot.slane %v697_v12, 4  ;;  %v721_v18 = vsel %vm612_vm1, %v713_v1, %v720_v13 }
 0x16a   : > { %725 = vst.msk [vmem:[#allocation2 + $0x10] sm:$0xff] %vm722_vm2, %v719_v15  ;;  %v993_v27 = vperm.slane %v987_v21, %v2398_v48  ;;  %v975_v30 = vsel %vm612_vm1, %v974_v26, %v956_v54  ;;  %v1004_v31 = vrot.slane %v985_v25, 4  ;;  %v1003_v36 = vsel %vm612_vm1, %v1002_v28, %v985_v25 }
 0x16b   : > { %v715_v20 = vsel %vm612_vm1, %v714_v14, %v697_v12  ;;  %726 = vst.msk [vmem:[#allocation2 + $0x18] sm:$0xff] %vm722_vm2, %v721_v18  ;;  %v717_v22 = vsel %vm612_vm1, %v709_v8, %v716_v17  ;;  %v981_v38 = vperm.slane %v975_v30, %v2398_v48  ;;  %v749_v45 = vrot.slane %v735_v43, 4 }
 0x16c   : > { %723 = vst.msk [vmem:[#allocation2] sm:$0xff] %vm722_vm2, %v715_v20  ;;  %v998_v34 = vrot.slane %v993_v27, 4  ;;  %v1005_v39 = vsel %vm612_vm1, %v997_v24, %v1004_v31  ;;  %v737_v49 = vrot.slane %v732_v46, 4  ;;  %v740_v50 = vsel %vm612_vm1, %v732_v46, %v739_v44 }
 0x16d   : > { %724 = vst.msk [vmem:[#allocation2 + $0x8] sm:$0xff] %vm722_vm2, %v717_v22  ;;  %v1000_v41 = vrot.slane %v981_v38, 4  ;;  %v751_v51 = vrot.slane %v729_v47, 4  ;;  %v750_v52 = vsel %vm612_vm1, %v749_v45, %v729_v47  ;;  %v748_v53 = vperm.slane %v740_v50, %v2388_v33 }
 0x16e   : > { %v999_v40 = vsel %vm612_vm1, %v998_v34, %v981_v38  ;;  %v756_v54 = vperm.slane %v750_v52, %v2388_v33  ;;  %v738_v55 = vsel %vm612_vm1, %v737_v49, %v2383_v23 }
 0x16f   : > { %v1001_v42 = vsel %vm612_vm1, %v993_v27, %v1000_v41  ;;  %v752_v56 = vsel %vm612_vm1, %v735_v43, %v751_v51  ;;  %v744_v57 = vperm.slane %v738_v55, %v2388_v33  ;;  %v775_v58 = vrot.slane %v748_v53, 4 }
 0x170   : > { %v760_v59 = vperm.slane %v752_v56, %v2388_v33  ;;  %v761_v60 = vrot.slane %v756_v54, 4 }
 0x171   : > { %v1008_v29 = vld [vmem:[#allocation2 + $0x10] sm:$0xff]  ;;  %v763_v61 = vrot.slane %v744_v57, 4 }
 0x172   : > { %1680 = vmatpush.xpose.msk.msrb.mxu0 %vm722_vm2, %v1008_v29  ;;  %v1009_v32 = vld [vmem:[#allocation2 + $0x18] sm:$0xff]  ;;  %v762_v62 = vsel %vm612_vm1, %v761_v60, %v744_v57  ;;  %v773_v63 = vrot.slane %v760_v59, 4  ;;  %v776_v0 = vsel %vm612_vm1, %v760_v59, %v775_v58 }
 0x173   : > { %v1006_v35 = vld [vmem:[#allocation2] sm:$0xff]  ;;  %1682 = vmatpush.xpose.msk.msrb.mxu1 %vm722_vm2, %v1009_v32  ;;  %v768_v1 = vperm.slane %v762_v62, %v2398_v48  ;;  %v784_v2 = vperm.slane %v776_v0, %v2398_v48  ;;  %v764_v23 = vsel %vm612_vm1, %v756_v54, %v763_v61 }
 0x174   : > { %1676 = vmatpush.xpose.msk.msra.mxu3 %vm722_vm2, %v1006_v35  ;;  %v1007_v37 = vld [vmem:[#allocation2 + $0x8] sm:$0xff]  ;;  %v774_v3 = vsel %vm612_vm1, %v773_v63, %v748_v53  ;;  %v772_v4 = vperm.slane %v764_v23, %v2398_v48 }
 0x175   : > { %1681 = vmatmul.msk.f32.vlgmr.msrb.gmra.mxu0 %vm722_vm2, %v1003_v36  ;;  %v780_v5 = vperm.slane %v774_v3, %v2398_v48  ;;  %v785_v6 = vrot.slane %v768_v1, 4  ;;  %v791_v7 = vrot.slane %v784_v2, 4 }
 0x176   : > { %1683 = vmatmul.msk.f32.vlgmr.msrb.gmra.mxu1 %vm722_vm2, %v1005_v39  ;;  %v787_v8 = vrot.slane %v772_v4, 4 }
 0x177   : > { %1677 = vmatmul.msk.f32.vlgmr.msra.gmra.mxu3 %vm722_vm2, %v999_v40  ;;  %v789_v9 = vrot.slane %v780_v5, 4  ;;  %v792_v10 = vsel %vm612_vm1, 0.0, %v791_v7  ;;  %v786_v12 = vsel %vm612_vm1, 0.0, %v785_v6  ;;  %v804_v13 = vsel %vm612_vm1, %v791_v7, %v780_v5 }
 0x178   : > { %1678 = vmatpush.xpose.msk.msrb.mxu3 %vm722_vm2, %v1007_v37  ;;  %v809_v14 = vrot.slane %v792_v10, 4  ;;  %v788_v15 = vsel %vm612_vm1, 0.0, %v787_v8  ;;  %v793_v17 = vsel %vm612_vm1, %v787_v8, %v768_v1  ;;  %v808_v18 = vperm.slane %v804_v13, %v2388_v33 }
 0x179   : > { %v790_v16 = vsel %vm612_vm1, 0.0, %v789_v9  ;;  %v797_v19 = vperm.slane %v793_v17, %v2388_v33  ;;  %v798_v20 = vrot.slane %v788_v15, 4 }
 0x17a   : > { %v810_v21 = vsel %vm612_vm1, %v809_v14, %v790_v16  ;;  %v829_v24 = vrot.slane %v808_v18, 4 }
 0x17b   : > { %v814_v22 = vperm.slane %v810_v21, %v2388_v33  ;;  %v799_v25 = vsel %vm612_vm1, %v798_v20, %v786_v12  ;;  %v817_v26 = vrot.slane %v797_v19, 4 }
 0x17c   : > { %v803_v27 = vperm.slane %v799_v25, %v2388_v33 }
 0x17d   : > { %v827_v28 = vrot.slane %v814_v22, 4  ;;  %v830_v29 = vsel %vm612_vm1, %v814_v22, %v829_v24 }
 0x17e   : > { %v838_v30 = vperm.slane %v830_v29, %v2398_v48  ;;  %v815_v31 = vrot.slane %v803_v27, 4  ;;  %v818_v32 = vsel %vm612_vm1, %v803_v27, %v817_v26 }
 0x17f   : > { %1679 = vmatmul.msk.f32.vlgmr.msrb.gmra.mxu3 %vm722_vm2, %v1001_v42  ;;  %v828_v34 = vsel %vm612_vm1, %v827_v28, %v808_v18  ;;  %v826_v35 = vperm.slane %v818_v32, %v2398_v48 }
 0x180   : > { %v834_v36 = vperm.slane %v828_v34, %v2398_v48  ;;  %v843_v37 = vrot.slane %v838_v30, 4  ;;  %v816_v38 = vsel %vm612_vm1, %v815_v31, %v797_v19 }
 0x181   : > { %v822_v39 = vperm.slane %v816_v38, %v2398_v48  ;;  %v845_v42 = vrot.slane %v826_v35, 4 }
 0x182   : > { %v839_v40 = vrot.slane %v834_v36, 4  ;;  %v844_v41 = vsel %vm612_vm1, %v843_v37, %v826_v35 }
 0x183   : > { %849 = vst.msk [vmem:[#allocation3 + $0x10] sm:$0xff] %vm722_vm2, %v844_v41  ;;  %v841_v44 = vrot.slane %v822_v39, 4  ;;  %v846_v45 = vsel %vm612_vm1, %v838_v30, %v845_v42 }
 0x184   : > { %v840_v43 = vsel %vm612_vm1, %v839_v40, %v822_v39  ;;  %850 = vst.msk [vmem:[#allocation3 + $0x18] sm:$0xff] %vm722_vm2, %v846_v45 }
 0x185   : > { %847 = vst.msk [vmem:[#allocation3] sm:$0xff] %vm722_vm2, %v840_v43  ;;  %v842_v46 = vsel %vm612_vm1, %v834_v36, %v841_v44 }
 0x186   : > { %848 = vst.msk [vmem:[#allocation3 + $0x8] sm:$0xff] %vm722_vm2, %v842_v46 }
 0x18a   : > { %v1012_v47 = vld [vmem:[#allocation3 + $0x10] sm:$0xff] }
 0x18b   : > { %1219 = vmatpush.msra.mxu0 %v1012_v47  ;;  %v1013_v50 = vld [vmem:[#allocation3 + $0x18] sm:$0xff] }
 0x18c   : > { %v1010_v49 = vld [vmem:[#allocation3] sm:$0xff]  ;;  %1242 = vmatpush.msra.mxu1 %v1013_v50 }
 0x18d   : > { %1173 = vmatpush.msrb.mxu2 %v1010_v49  ;;  %v1011_v51 = vld [vmem:[#allocation3 + $0x8] sm:$0xff] }
 0x18e   : > { %1196 = vmatpush.msra.mxu3 %v1011_v51 }
 0x1f2   : > { %v1090_v52 = vpop.f32.mrf.mxu0 }
 0x1f3   : > { %v1125_v53 = vsel %vm722_vm2, %v1090_v52, -inf  ;;  %v1116_v54 = vpop.f32.mrf.mxu1 }
 0x1f4   : > { %1126 = vmax.xlane.f32.xlu2 %v1125_v53  ;;  %v1128_v56 = vsel %vm722_vm2, %v1116_v54, -inf }
 0x1fa   : > { %v1038_v55 = vpop.f32.mrf.mxu3 }
 0x1fb   : > { %v1119_v57 = vsel %vm722_vm2, %v1038_v55, -inf }
 0x1fc   : > { %1129 = vmax.xlane.f32.xlu2 %v1128_v56  ;;  %1120 = vmax.xlane.f32.xlu0 %v1119_v57 }
 0x202   : > { %v1064_v58 = vpop.f32.mrf.mxu3 }
 0x203   : > { %v1122_v59 = vsel %vm722_vm2, %v1064_v58, -inf }
 0x204   : > { %1123 = vmax.xlane.f32.xlu1 %v1122_v59 }
 0x267   : > { %v1127_v60 = vpop.xlane.xlu2 %1126 }
 0x268   : > { %v1133_v61 = vsub.f32 %v1090_v52, %v1127_v60 }
 0x26a   : > { %v1139_v62 = vmul.f32 1.442695, %v1133_v61 }
 0x26c   : > { %1819 = vpow2.f32 %v1139_v62 }
 0x26f   : > { %v1130_v63 = vpop.xlane.xlu2 %1129  ;;  %v1121_v0 = vpop.xlane.xlu0 %1120 }
 0x270   : > { %v1134_v1 = vsub.f32 %v1116_v54, %v1130_v63  ;;  %v1131_v2 = vsub.f32 %v1038_v55, %v1121_v0 }
 0x272   : > { %v1820_v23 = vpop.eup %1819  ;;  %v1141_v3 = vmul.f32 1.442695, %v1134_v1  ;;  %v1135_v4 = vmul.f32 1.442695, %v1131_v2 }
 0x273   : > { %1686 = vmatmul.msk.f32.vlgmr.msra.gmra.mxu0 %vm722_vm2, %v1820_v23  ;;  %v1149_v5 = vsel %vm722_vm2, %v1820_v23, 0.0 }
 0x274   : > { %1821 = vpow2.f32 %v1141_v3  ;;  %1150 = vadd.xlane.f32.xlu0 %v1149_v5 }
 0x275   : > { %1823 = vpow2.f32 %v1135_v4 }
 0x277   : > { %v1124_v6 = vpop.xlane.xlu1 %1123 }
 0x278   : > { %v1132_v7 = vsub.f32 %v1064_v58, %v1124_v6 }
 0x27a   : > { %v1822_v8 = vpop.eup %1821  ;;  %v1137_v9 = vmul.f32 1.442695, %v1132_v7 }
 0x27b   : > { %v1824_v10 = vpop.eup %1823  ;;  %1687 = vmatmul.msk.f32.vlgmr.msra.gmra.mxu1 %vm722_vm2, %v1822_v8  ;;  %v1152_v12 = vsel %vm722_vm2, %v1822_v8, 0.0 }
 0x27c   : > { %1825 = vpow2.f32 %v1137_v9  ;;  %1684 = vmatmul.msk.f32.vlgmr.msrb.gmra.mxu2 %vm722_vm2, %v1824_v10  ;;  %1153 = vadd.xlane.f32.xlu2 %v1152_v12  ;;  %v1143_v13 = vsel %vm722_vm2, %v1824_v10, 0.0 }
 0x27d   : > { %1144 = vadd.xlane.f32.xlu1 %v1143_v13 }
 0x282   : > { %v1826_v14 = vpop.eup %1825 }
 0x283   : > { %1685 = vmatmul.msk.f32.vlgmr.msra.gmra.mxu3 %vm722_vm2, %v1826_v14  ;;  %v1146_v15 = vsel %vm722_vm2, %v1826_v14, 0.0 }
 0x284   : > { %1147 = vadd.xlane.f32.xlu0 %v1146_v15 }
 0x2e7   : > { %v1151_v16 = vpop.xlane.xlu0 %1150 }
 0x2e8   : > { %1827 = vrcp.f32 %v1151_v16  ;;  %v1286_v26 = vand.u32 2147483647, %v1151_v16  ;;  %v1288_v27 = vand.u32 2147483648, %v1151_v16  ;;  %vm1282_vm4 = vweird.f32 %v1151_v16 }
 0x2ea   : > { %vm1287_vm6 = vcmp.eq.f32.partialorder %v1286_v26, 8.507059e+37  ;;  %v1289_v36 = vor.u32 1.1754944e-38, %v1288_v27 }
 0x2ee   : > { %v1828_v17 = vpop.eup %1827 }
 0x2ef   : > { %v1278_v18 = vmul.f32 %v1828_v17, %v1151_v16  ;;  %v1154_v19 = vpop.xlane.xlu2 %1153  ;;  %vm1283_vm3 = vweird.f32 %v1828_v17 }
 0x2f0   : > { %1829 = vrcp.f32 %v1154_v19  ;;  %v1145_v20 = vpop.xlane.xlu1 %1144  ;;  %vm1284_vm5 = vmor %vm1282_vm4, %vm1283_vm3  ;;  %v1303_v38 = vand.u32 2147483648, %v1154_v19  ;;  %vm1297_vm9 = vweird.f32 %v1154_v19  ;;  %v1301_v44 = vand.u32 2147483647, %v1154_v19  ;;  %v1221_v46 = vpop.f32.mrf.mxu0 }
 0x2f1   : > { %v1279_v21 = vsub.f32 1.0, %v1278_v18  ;;  %1831 = vrcp.f32 %v1145_v20  ;;  %v1258_v39 = vand.u32 2147483648, %v1145_v20  ;;  %v1256_v42 = vand.u32 2147483647, %v1145_v20 }
 0x2f2   : > { %vm1252_vm11 = vweird.f32 %v1145_v20  ;;  %v1304_v54 = vor.u32 1.1754944e-38, %v1303_v38  ;;  %vm1302_vm14 = vcmp.eq.f32.partialorder %v1301_v44, 8.507059e+37 }
 0x2f3   : > { %v1280_v22 = vmul.f32 %v1828_v17, %v1279_v21  ;;  %v1259_v53 = vor.u32 1.1754944e-38, %v1258_v39  ;;  %vm1257_vm13 = vcmp.eq.f32.partialorder %v1256_v42, 8.507059e+37 }
 0x2f5   : > { %v1281_v24 = vadd.f32 %v1828_v17, %v1280_v22 }
 0x2f6   : > { %v1830_v25 = vpop.eup %1829 }
 0x2f7   : > { %v1832_v28 = vpop.eup %1831  ;;  %v1293_v29 = vmul.f32 %v1830_v25, %v1154_v19  ;;  %v1148_v30 = vpop.xlane.xlu0 %1147  ;;  %v1285_v34 = vsel %vm1284_vm5, %v1828_v17, %v1281_v24  ;;  %vm1298_vm7 = vweird.f32 %v1830_v25 }
 0x2f8   : > { %v1248_v31 = vmul.f32 %v1832_v28, %v1145_v20  ;;  %1833 = vrcp.f32 %v1148_v30  ;;  %v1290_v40 = vsel %vm1287_vm6, %v1289_v36, %v1285_v34  ;;  %vm1253_vm8 = vweird.f32 %v1832_v28  ;;  %vm2542_vm10 = vmor %vm1297_vm9, %vm1298_vm7  ;;  %v1244_v1 = vpop.f32.mrf.mxu1 }
 0x2f9   : > { %v1294_v32 = vsub.f32 1.0, %v1293_v29  ;;  %v1291_v50 = vmul.f32 %v1290_v40, %v1221_v46  ;;  %vm1254_vm12 = vmor %vm1252_vm11, %vm1253_vm8  ;;  %v1273_v61 = vand.u32 2147483648, %v1148_v30  ;;  %v1271_v0 = vand.u32 2147483647, %v1148_v30 }
 0x2fa   : > { %v1249_v35 = vsub.f32 1.0, %v1248_v31  ;;  %vm1267_vm3 = vweird.f32 %v1148_v30  ;;  %vm1430_vm6 = vcmask 130048   ;;  %vm1432_vm7 = vcmask 195584  }
 0x2fb   : > { %v1295_v37 = vmul.f32 %v1830_v25, %v1294_v32  ;;  %v1307_v62 = vrot.slane %v1291_v50, 4  ;;  %v1274_v5 = vor.u32 1.1754944e-38, %v1273_v61  ;;  %vm1272_vm5 = vcmp.eq.f32.partialorder %v1271_v0, 8.507059e+37 }
 0x2fc   : > { %v1250_v41 = vmul.f32 %v1832_v28, %v1249_v35 }
 0x2fd   : > { %v1296_v43 = vadd.f32 %v1830_v25, %v1295_v37 }
 0x2fe   : > { %v1834_v45 = vpop.eup %1833  ;;  %v1251_v49 = vadd.f32 %v1832_v28, %v1250_v41 }
 0x2ff   : > { %v1263_v51 = vmul.f32 %v1834_v45, %v1148_v30  ;;  %v1300_v52 = vsel %vm2542_vm10, %v1830_v25, %v1296_v43  ;;  %v1175_v57 = vpop.f32.mrf.mxu2  ;;  %vm1268_vm15 = vweird.f32 %v1834_v45 }
 0x300   : > { %v1255_v55 = vsel %vm1254_vm12, %v1832_v28, %v1251_v49  ;;  %v1305_v59 = vsel %vm1302_vm14, %v1304_v54, %v1300_v52  ;;  %vm1269_vm4 = vmor %vm1267_vm3, %vm1268_vm15 }
 0x301   : > { %v1264_v56 = vsub.f32 1.0, %v1263_v51  ;;  %v1260_v58 = vsel %vm1257_vm13, %v1259_v53, %v1255_v55  ;;  %v1306_v23 = vmul.f32 %v1305_v59, %v1244_v1 }
 0x302   : > { %v1261_v60 = vmul.f32 %v1260_v58, %v1175_v57 }
 0x303   : > { %v1265_v63 = vmul.f32 %v1834_v45, %v1264_v56  ;;  %v1319_v12 = vrot.slane %v1306_v23, 4 }
 0x304   : > { %v1309_v2 = vrot.slane %v1261_v60, 4  ;;  %v1308_v3 = vsel %vm612_vm1, %v1307_v62, %v1261_v60 }
 0x305   : > { %v1266_v4 = vadd.f32 %v1834_v45, %v1265_v63  ;;  %v1314_v8 = vperm.slane %v1308_v3, %v2388_v33 }
 0x306   : > { %v1310_v6 = vsel %vm612_vm1, %v1291_v50, %v1309_v2  ;;  %v1198_v9 = vpop.f32.mrf.mxu3 }
 0x307   : > { %v1270_v7 = vsel %vm1269_vm4, %v1834_v45, %v1266_v4  ;;  %v1318_v14 = vperm.slane %v1310_v6, %v2388_v33  ;;  %v1333_v17 = vrot.slane %v1314_v8, 4 }
 0x308   : > { %v1275_v10 = vsel %vm1272_vm5, %v1274_v5, %v1270_v7  ;;  %v1437_v7 = vld [vmem:[#allocation13 + $0x18] sm:$0xff] }
 0x309   : > { %v1276_v13 = vmul.f32 %v1275_v10, %v1198_v9  ;;  %v1345_v20 = vrot.slane %v1318_v14, 4  ;;  %1457 = vmatpush.msra.mxu2 %v1437_v7  ;;  %v1435_v9 = vld [vmem:[#allocation13 + $0x8] sm:$0xff] }
 0x30b   : > { %v1320_v15 = vsel %vm612_vm1, %v1319_v12, %v1276_v13  ;;  %v1321_v16 = vrot.slane %v1276_v13, 4 }
 0x30c   : > { %v1326_v18 = vperm.slane %v1320_v15, %v2388_v33 }
 0x30d   : > { %v1322_v19 = vsel %vm612_vm1, %v1306_v23, %v1321_v16 }
 0x30e   : > { %v1330_v21 = vperm.slane %v1322_v19, %v2388_v33  ;;  %v1331_v22 = vrot.slane %v1326_v18, 4  ;;  %v1334_v24 = vsel %vm612_vm1, %v1326_v18, %v1333_v17  ;;  %v1816_v17 = vld [vmem:[%s2687_s13] ss:$0 sm:$0xff]  ;;  %s1524_s13 = sshll.u32 %s1520_s18, 4  ;;  %s1525_s13 = int_to_ptr.hbm [resolvable:$true] %s1524_s13 }
 0x30f   : > { %v1342_v25 = vperm.slane %v1334_v24, %v2398_v48  ;;  %s2033_s20 = sshra.s32 %s1525_s13, 4  ;;  %s2034_s20 = int_to_ptr.hbm [resolvable:$true] %s2033_s20 }
 0x310   : > { %v1332_v26 = vsel %vm612_vm1, %v1331_v22, %v1314_v8  ;;  %v1343_v27 = vrot.slane %v1330_v21, 4  ;;  %v1346_v28 = vsel %vm612_vm1, %v1330_v21, %v1345_v20  ;;  %v1436_v8 = vld [vmem:[#allocation13 + $0x10] sm:$0xff]  ;;  %s2035_s12 = scalar_lea.hbm %s2034_s20, 8  ;;  %p2040_p9 = scmp.lt.s32.totalorder %s2034_s20, %s2691_s9 }
 0x311   : > { %v1338_v29 = vperm.slane %v1332_v26, %v2398_v48  ;;  %v1354_v30 = vperm.slane %v1346_v28, %v2398_v48  ;;  %v1357_v31 = vrot.slane %v1342_v25, 4  ;;  %1458 = vmatpush.msra.mxu2 %v1436_v8  ;;  %v2134_v25 = vmov 32.0   ;;  %p2036_p4 = scmp.ne.s32.totalorder %s2034_s20, %s2035_s12  ;;  %p2041_p1 = scmp.lt.s32.totalorder %s2039_s14, %s2035_s12 }
 0x312   : > { %v1344_v32 = vsel %vm612_vm1, %v1343_v27, %v1318_v14  ;;  %1835 = vrcp.f32 %v2134_v25 }
 0x313   : > { %v1350_v34 = vperm.slane %v1344_v32, %v2398_v48  ;;  %v1355_v35 = vrot.slane %v1338_v29, 4  ;;  %v1358_v36 = vsel %vm612_vm1, 0.0, %v1357_v31  ;;  %v1361_v37 = vrot.slane %v1354_v30, 4  ;;  %1459 = vmatpush.msra.mxu2 %v1435_v9  ;;  %p2037_p5 = pnand %p2036_p4, %p2322_p0  ;;  %p2042_p6 = por %p2041_p1, %p2040_p9 }
 0x314   : > { %v1363_v38 = vsel %vm612_vm1, %v1357_v31, %v1338_v29  ;;  %v1368_v39 = vrot.slane %v1358_v36, 4 }
 0x315   : > { %v1362_v40 = vsel %vm612_vm1, 0.0, %v1361_v37  ;;  %v1356_v41 = vsel %vm612_vm1, 0.0, %v1355_v35  ;;  %v1359_v42 = vrot.slane %v1350_v34, 4  ;;  %v1367_v43 = vperm.slane %v1363_v38, %v2388_v33  ;;  %p2038_p7 = pneg %p2037_p5 }
 0x316   : > { %v1379_v44 = vrot.slane %v1362_v40, 4  ;;  %v1369_v45 = vsel %vm612_vm1, %v1368_v39, %v1356_v41  ;;  %v1374_v46 = vsel %vm612_vm1, %v1361_v37, %v1350_v34 }
 0x317   : > { %v1360_v47 = vsel %vm612_vm1, 0.0, %v1359_v42  ;;  %v1373_v49 = vperm.slane %v1369_v45, %v2388_v33  ;;  %v1378_v50 = vperm.slane %v1374_v46, %v2388_v33  ;;  %v1387_v51 = vrot.slane %v1367_v43, 4  ;;  %v1817_v46 = vld [vmem:[%s2689_s28] ss:$0 sm:$0xff]  ;;  %p2043_p10 = pnand %p2042_p6, %p2038_p7 }
 0x318   : > { %v1380_v52 = vsel %vm612_vm1, %v1379_v44, %v1360_v47  ;;  %v1836_v26 = vpop.eup %1835 }
 0x319   : > { %v1384_v53 = vperm.slane %v1380_v52, %v2388_v33  ;;  %v1388_v54 = vsel %vm612_vm1, %v1373_v49, %v1387_v51  ;;  %v1399_v55 = vrot.slane %v1378_v50, 4  ;;  %v1385_v56 = vrot.slane %v1373_v49, 4 }
 0x31a   : > { %v1396_v57 = vperm.slane %v1388_v54, %v2398_v48  ;;  %v1472_v27 = vmul.f32 32.0, %v1836_v26 }
 0x31b   : > { %v1400_v58 = vsel %vm612_vm1, %v1384_v53, %v1399_v55  ;;  %v1386_v59 = vsel %vm612_vm1, %v1385_v56, %v1367_v43  ;;  %v1397_v60 = vrot.slane %v1384_v53, 4 }
 0x31c   : > { %v1408_v61 = vperm.slane %v1400_v58, %v2398_v48  ;;  %v1415_v62 = vrot.slane %v1396_v57, 4  ;;  %v1392_v63 = vperm.slane %v1386_v59, %v2398_v48  ;;  %v1473_v28 = vsub.f32 1.0, %v1472_v27 }
 0x31d   : > { %v1398_v0 = vsel %vm612_vm1, %v1397_v60, %v1378_v50 }
 0x31e   : > { %v1416_v33 = vsel %vm612_vm1, %v1408_v61, %v1415_v62  ;;  %v1413_v1 = vrot.slane %v1408_v61, 4  ;;  %v1404_v2 = vperm.slane %v1398_v0, %v2398_v48  ;;  %v1411_v23 = vrot.slane %v1392_v63, 4  ;;  %v1434_v48 = vld [vmem:[#allocation13] sm:$0xff] }
 0x31f   : > { %1426 = vrot.lane.b32.xlu0 %v1416_v33, %s2131_s30  ;;  %1460 = vmatpush.msra.mxu2 %v1434_v48  ;;  %v1474_v29 = vmul.f32 %v1836_v26, %v1473_v28 }
 0x320   : > { %v1414_v3 = vsel %vm612_vm1, %v1413_v1, %v1396_v57  ;;  %v1409_v4 = vrot.slane %v1404_v2, 4  ;;  %v1412_v5 = vsel %vm612_vm1, %v1404_v2, %v1411_v23 }
 0x321   : > { %1422 = vrot.lane.b32.xlu2 %v1414_v3, %s2132_s19  ;;  %1418 = vrot.lane.b32.xlu1 %v1412_v5, %s2133_s21  ;;  %v1475_v30 = vadd.f32 %v1836_v26, %v1474_v29  ;;  %s2692_s21 = sld [smem:[#allocation29_spill]] }
 0x322   : > { %v1410_v6 = vsel %vm612_vm1, %v1409_v4, %v1392_v63  ;;  %vm1476_vm1 = vweird.f32 %v1836_v26 }
 0x323   : > { %v1477_v31 = vsel %vm1476_vm1, %v1836_v26, %v1475_v30 }
 0x327   : > { %v1818_v50 = vld [vmem:[%s2692_s21] ss:$0 sm:$0xff] }
 0x37b   : > { %v1423_v12 = vpop.permute.xlu2 %1422 }
 0x391   : > { %v1427_v14 = vpop.permute.xlu0 %1426 }
 0x393   : > { %v1419_v10 = vpop.permute.xlu1 %1418 }
 0x394   : > { %v1429_v13 = vsel %vm722_vm2, %v1410_v6, %v1419_v10 }
 0x395   : > { %v1431_v15 = vsel %vm1430_vm6, %v1429_v13, %v1423_v12 }
 0x396   : > { %v1433_v16 = vsel %vm1432_vm7, %v1431_v15, %v1427_v14 }
 0x397   : > { %1688 = vmatmul.msk.f32.vlgmr.msra.gmra.mxu2 %vm549_vm0, %v1433_v16 }
 0x41a   : > { %v1462_v18 = vpop.f32.mrf.mxu2 }
 0x41b   : > { %v1463_v19 = vadd.f32 %v1816_v17, %v1462_v18 }
 0x41d   : > { %v1465_v20 = vadd.f32 %v1463_v19, %v2368_v11 }
 0x41f   : > { %v1468_v21 = vsel %vm549_vm0, %v1465_v20, 0.0  ;;  %v1479_v22 = vmul.f32 %v1465_v20, %v1465_v20 }
 0x420   : > { %1469 = vadd.xlane.f32.xlu1 %v1468_v21 }
 0x421   : > { %v1480_v24 = vsel %vm549_vm0, %v1479_v22, 0.0 }
 0x422   : > { %1481 = vadd.xlane.f32.xlu0 %v1480_v24 }
 0x493   : > { %v1470_v32 = vpop.xlane.xlu1 %1469 }
 0x494   : > { %v1478_v34 = vmul.f32 %v1477_v31, %v1470_v32 }
 0x495   : > { %v1482_v35 = vpop.xlane.xlu0 %1481 }
 0x496   : > { %v1484_v11 = vmul.f32 %v1478_v34, %v1478_v34  ;;  %v1483_v36 = vmul.f32 %v1482_v35, %v1477_v31  ;;  %v1486_v45 = vsub.f32 %v1465_v20, %v1478_v34 }
 0x498   : > { %v1485_v37 = vsub.f32 %v1483_v36, %v1484_v11 }
 0x49a   : > { %v1487_v38 = vadd.f32 1e-05, %v1485_v37 }
 0x49c   : > { %1837 = vrsqrt.f32 %v1487_v38  ;;  %vm1494_vm8 = vweird.f32 %v1487_v38 }
 0x4a2   : > { %v1838_v39 = vpop.eup %1837 }
 0x4a3   : > { %v1489_v40 = vmul.f32 %v1838_v39, %v1487_v38  ;;  %vm1495_vm2 = vweird.f32 %v1838_v39 }
 0x4a4   : > { %vm1496_vm9 = vmor %vm1494_vm8, %vm1495_vm2 }
 0x4a5   : > { %v1490_v41 = vmul.f32 %v1838_v39, %v1489_v40 }
 0x4a7   : > { %v1491_v42 = vmul.f32 0.5, %v1490_v41 }
 0x4a9   : > { %v1492_v43 = vsub.f32 1.5, %v1491_v42 }
 0x4ab   : > { %v1493_v44 = vmul.f32 %v1838_v39, %v1492_v43 }
 0x4ad   : > { %v1497_v47 = vsel %vm1496_vm9, %v1838_v39, %v1493_v44 }
 0x4ae   : > { %v1498_v49 = vmul.f32 %v1497_v47, %v1486_v45 }
 0x4b0   : > { %v1502_v51 = vmul.f32 %v1817_v46, %v1498_v49 }
 0x4b2   : > { %v1506_v52 = vadd.f32 %v1818_v50, %v1502_v51 }
 0x4b4   : > { %1507 = vst.msk [vmem:[%s535_s15] sm:$0xff] %vm549_vm0, %v1506_v52 }
 0x4b5   : > { %2046 = shalt.err (!%p2043_p10)
}
 0x4b6   : > { %1713 = dma.vmem_to_hbm [thread:$0]  (%p2322_p0), %s1523_s29, 128, %s1525_s13, %s1509_s16  }
 0x4b7 PF: > { %s2693_s27 = sld [smem:[#allocation22_spill]] }
 0x4b8   : > { %s2694_s18 = sld [smem:[#allocation24_spill]] }
 0x4bd   : > { %s1536_s30 = sand.u32 1, %s2693_s27  }
 0x4be   : > { %p2695_p13 = scmp.ne.s32.totalorder %s2694_s18, 0  ;;  %s1537_s19 = scalar_lea.sflag [#allocation6], %s1536_s30 }
 0x4c0   : > { %p1736_p11 = pnand %p1663_p12, %p2695_p13 }
 0x4c2   : > { %p1737_p3 = pneg %p1736_p11 }
 0x4c4   : > { %2092 = dma.done.wait (%p1737_p3), %s1537_s19, 128  }
 0x4c5   : > { %2094 = vsyncadd (%p1737_p3), %s1537_s19, 4294967168  ;;  %s31_s26 = sadd.s32 1, %s2117_s26   ;;  %s2696_s21 = smov %s2101_s22 }
 0x4c6   : > { %p28_p2 = scmp.ge.s32.totalorder %s31_s26, 4   ;;  %s2697_s22 = smov %s2105_s23 }
 0x4c7   : > { %s2698_s23 = smov %s2331_s24  ;;  %s2699_s24 = smov %s2113_s25 }
 0x4c8   : > { %s2700_s25 = smov %s2702_s11  ;;  %30 = sbr.rel (!%p28_p2) target bundleno = 16 (0x10), region = 138 }
 0x4cd   :  { %1543 = vsyncpa [#allocation5], 1 }
 0x4ce   :  { %1545 = vsyncpa [#allocation5 + $0x1], 1 }
 0x4cf   :  { %1546 = vsyncpa [#allocation8], 1 }
 0x4d0   :  { %1547 = vsyncpa [#allocation11], 1 }
 0x4d1   :  { %1548 = vsyncpa [#allocation14], 1 }
 0x4d2   :  { %1549 = vsyncpa [#allocation6], 1 }
 0x4d3   :  { %1551 = vsyncpa [#allocation6 + $0x1], 1 }

</bundles_post_ra>
